<compile_context>
chip_gen: v5e
topology: v5e:2x2
jax: 0.10.0
libtpu: 0.0.40
codegen_flags: <defaults>
</compile_context>

<pallas_src>
import math
import numpy as np

import jax
import jax.numpy as jnp
from jax.experimental import pallas as pl
from jax.experimental.pallas import tpu as pltpu

# ----------------------------- config ---------------------------------------
B = 8          # batch rows per grid step (fills the 8 sublanes of a vreg)
G = 2          # number of independent agent groups (grid size); total batch = G*B
N = 8          # max_navigable
T = 8          # max instruction length (= max_len)
D = 32         # img_feat_input_dim (navigable feature dim w/o visited marker)
TL = 8         # opts.tiled_len (visited-marker width)
F = 32         # img_fc_dim[-1]
H = 32         # rnn_hidden_size
NUM_IMGS = 4   # img_feat only contributes batch_size in the forward pass

LANE = 128
NEG_INF = -1e30

# ---- weight slab layout (416 rows x 128 lanes, f32) -------------------------
# Fused block A (rows 0:128): block-diagonal [proj | h0_fc | h1_fc] + bias row.
R_A = 0
R_A_BIAS = 127
FUSED_A_ROWS = 128
R_LSTM = 128                      # rows 128:256  [W_ih(pre|img|ctx) ; W_hh]
R_LOGIT = R_LSTM + 2 * F + 2 * H  # 256: rows for [weighted_ctx | h1]
R_H2 = R_LOGIT + 2 * H            # 320: rows for [h0 | weighted_img]
R_MOVE = R_H2 + H + F             # 384: move_fc (F rows, F+TL lanes)
W_ROWS = R_MOVE + F               # 416

# ---- bias slab rows ----------------------------------------------------------
BR_LSTM, BR_LOGIT, BR_H2, BR_CRITIC, BR_MOVE = 0, 1, 2, 3, 4
B_ROWS = 8
CC_WC_ATTN = 0                    # (T,)  critic_fc weight, ctx_attn part
CC_WC_VAL = T                     # (H,)  critic_fc weight, h1_value part
CC_B_C = T + H                    # (1,)  critic_fc bias
CC_W_VD = T + H + 1               # (2,)  critic_valueDiff_fc weight
CC_B_VD = T + H + 3               # (2,)  critic_valueDiff_fc bias

# ---- per-group activation slab layout (224 rows x 128 lanes) -----------------
A_ROWS = B * N + 3 * B            # 88: [nav_flat(64) ; pre(8) ; h0@32:64(8) ; h0@64:96(8)]
XR_A = 0
XR_CTX = A_ROWS                   # 88 : ctx(+PE), lanes 0:H
XR_NAVVIS = XR_CTX + B * T        # 152: visited markers, lanes 0:TL
XR_ACTS = XR_NAVVIS + B * N       # 216: per-row state & scalars
X_ROWS = XR_ACTS + B              # 224
XC_H0 = 0
XC_C0 = H                         # 32
XC_PVAL = 2 * H                   # 64
XC_SEQ = 2 * H + 1                # 65  seq_lengths (float)
XC_IDXLEN = 2 * H + 2             # 66  navigable index_length (float)
XC_RB = 2 * H + 3                 # 67  rollback index (+1, float)
XC_ONE = LANE - 1                 # 127 ones column (fused-A bias trick)

# ---- packed output columns ----------------------------------------------------
OC_H1 = 0
OC_C1 = H
OC_IMG = 2 * H                    # 64
OC_CTX = OC_IMG + N               # 72
OC_LOGIT = OC_CTX + T             # 80
OC_RB_ATTN = OC_LOGIT + N         # 88
OC_RB_LOGIT = OC_RB_ATTN + 2      # 90
OC_VALUE = OC_RB_LOGIT + 2        # 92
OC_NMASK = OC_VALUE + 1           # 93
OUT_USED = OC_NMASK + N           # 101


def _softmax_last(x):
    m = jnp.max(x, axis=-1, keepdims=True)
    e = jnp.exp(x - m)
    return e * pl.reciprocal(jnp.sum(e, axis=-1, keepdims=True), approx=True)


# ------------------------------- kernel --------------------------------------
def regretful_kernel(x_ref, w_ref, b_ref, out_ref):
    f32 = jnp.float32

    # ---- per-row scalars & masks (vectorized iota compares) ------------------
    acts = x_ref[XR_ACTS:XR_ACTS + B, :]                       # (B, 128)
    h0 = acts[:, XC_H0:XC_H0 + H]
    c0 = acts[:, XC_C0:XC_C0 + H]
    pval = acts[:, XC_PVAL:XC_PVAL + 1]
    seq_len = acts[:, XC_SEQ:XC_SEQ + 1]
    idx_len = acts[:, XC_IDXLEN:XC_IDXLEN + 1]
    rb_idx = acts[:, XC_RB:XC_RB + 1]

    iota_n = jax.lax.broadcasted_iota(jnp.int32, (1, N), 1).astype(f32)
    iota_t = jax.lax.broadcasted_iota(jnp.int32, (1, T), 1).astype(f32)
    nmask = (iota_n < idx_len).astype(f32)                     # (B, N)
    cmask = (iota_t < seq_len).astype(f32)                     # (B, T)
    onehot = (iota_n == rb_idx).astype(f32)                    # (B, N)

    # ---- fused block-diagonal dot: proj_navigable_mlp | h0_fc | h1_fc --------
    # (biases folded via lane-127 ones column / weight row 127)
    a_out = jnp.dot(x_ref[XR_A:XR_A + A_ROWS, :], w_ref[0:FUSED_A_ROWS, :],
                    preferred_element_type=f32)                # (88, 128)
    proj_all = jnp.maximum(a_out[0:B * N + B, 0:F], 0.0)       # ReLU (nav + pre)
    proj_nav = proj_all[0:B * N, :].reshape(B, N, F) * nmask[:, :, None]
    proj_pre = proj_all[B * N:B * N + B, :]                    # (B, F)
    q_img = a_out[B * N + B:B * N + 2 * B, F:2 * F]            # h0_fc(h0)  (B,F)
    q_ctx = a_out[B * N + 2 * B:B * N + 3 * B, 2 * F:2 * F + H]  # h1_fc(h0) (B,H)

    # ---- soft attention over navigable directions -----------------------------
    attn_img = jnp.sum(proj_nav * q_img[:, None, :], axis=2)   # (B, N)
    attn_img = jnp.where(nmask == 0.0, NEG_INF, attn_img)
    img_attn = _softmax_last(attn_img)
    weighted_img = jnp.sum(img_attn[:, :, None] * proj_nav, axis=1)  # (B, F)

    # ---- soft attention over context (PE pre-added in wrapper) ----------------
    ctx_pos = x_ref[XR_CTX:XR_CTX + B * T, 0:H].reshape(B, T, H)
    attn_ctx = jnp.sum(ctx_pos * q_ctx[:, None, :], axis=2)    # (B, T)
    attn_ctx = jnp.where(cmask == 0.0, NEG_INF, attn_ctx)
    ctx_attn = _softmax_last(attn_ctx)
    weighted_ctx = jnp.sum(ctx_attn[:, :, None] * ctx_pos, axis=1)   # (B, H)

    # ---- LSTMCell: concat-free sum of partial dots against row-stacked W ------
    gates = (jnp.dot(proj_pre, w_ref[R_LSTM:R_LSTM + F, :],
                     preferred_element_type=f32)
             + jnp.dot(weighted_img, w_ref[R_LSTM + F:R_LSTM + 2 * F, :],
                       preferred_element_type=f32)
             + jnp.dot(weighted_ctx, w_ref[R_LSTM + 2 * F:R_LSTM + 2 * F + H, :],
                       preferred_element_type=f32)
             + jnp.dot(h0, w_ref[R_LSTM + 2 * F + H:R_LSTM + 2 * F + 2 * H, :],
                       preferred_element_type=f32)
             + b_ref[BR_LSTM:BR_LSTM + 1, :])                  # (B, 4H)
    i_g = jax.nn.sigmoid(gates[:, 0:H])
    f_g = jax.nn.sigmoid(gates[:, H:2 * H])
    g_g = jnp.tanh(gates[:, 2 * H:3 * H])
    o_g = jax.nn.sigmoid(gates[:, 3 * H:4 * H])
    c1 = f_g * c0 + i_g * g_g
    h1 = o_g * jnp.tanh(c1)

    # ---- m_forward = logit_fc(cat(weighted_ctx, h1))  (partial dots) ----------
    m_forward = (jnp.dot(weighted_ctx, w_ref[R_LOGIT:R_LOGIT + H, :],
                         preferred_element_type=f32)
                 + jnp.dot(h1, w_ref[R_LOGIT + H:R_LOGIT + 2 * H, :],
                           preferred_element_type=f32)
                 + b_ref[BR_LOGIT:BR_LOGIT + 1, :])[:, 0:F]    # (B, F)

    # ---- m_rollback: one-hot gather from masked proj_nav ----------------------
    m_rollback = jnp.sum(onehot[:, :, None] * proj_nav, axis=1)  # (B, F)

    # ---- progress-monitor value head ------------------------------------------
    cvi = (jnp.dot(h0, w_ref[R_H2:R_H2 + H, :], preferred_element_type=f32)
           + jnp.dot(weighted_img, w_ref[R_H2 + H:R_H2 + H + F, :],
                     preferred_element_type=f32)
           + b_ref[BR_H2:BR_H2 + 1, :])[:, 0:H]                # (B, H)
    h1_value = jax.nn.sigmoid(cvi) * jnp.tanh(c1)              # (B, H)
    brow = b_ref[BR_CRITIC:BR_CRITIC + 1, :]                   # (1, 128)
    value = jnp.tanh(
        jnp.sum(ctx_attn * brow[:, CC_WC_ATTN:CC_WC_ATTN + T], axis=1,
                keepdims=True)
        + jnp.sum(h1_value * brow[:, CC_WC_VAL:CC_WC_VAL + H], axis=1,
                  keepdims=True)
        + brow[:, CC_B_C:CC_B_C + 1])                          # (B, 1)

    navvis = x_ref[XR_NAVVIS:XR_NAVVIS + B * N, 0:TL].reshape(B, N, TL)
    nav_visited_feat = value[:, :, None] * nmask[:, :, None] - navvis  # (B,N,TL)

    rb_logit = ((value - pval) * brow[:, CC_W_VD:CC_W_VD + 2]
                + brow[:, CC_B_VD:CC_B_VD + 2])                # (B, 2)
    rb_attn = _softmax_last(rb_logit)
    m_fr = rb_attn[:, 0:1] * m_rollback + rb_attn[:, 1:2] * m_forward  # (B, F)

    # ---- move_fc + final logits ------------------------------------------------
    move = (jnp.dot(m_fr, w_ref[R_MOVE:R_MOVE + F, :], preferred_element_type=f32)
            + b_ref[BR_MOVE:BR_MOVE + 1, :])                   # (B, 128)
    move_f = move[:, 0:F]
    move_t = move[:, F:F + TL]
    logit = (jnp.sum(proj_nav * move_f[:, None, :], axis=2)
             + jnp.sum(nav_visited_feat * move_t[:, None, :], axis=2))  # (B, N)

    # ---- pack all outputs into one lane-dense (B, 128) block -------------------
    pad = jnp.zeros((B, LANE - OUT_USED), f32)
    out_ref[...] = jnp.concatenate(
        [h1, c1, img_attn, ctx_attn, logit, rb_attn, rb_logit, value, nmask, pad],
        axis=1)


# ------------------------------ parameters -----------------------------------
def init_params(key):
    """Deterministic synthetic weights. Linear(in,out) stored transposed (in,out)."""
    def lin(k, shape, scale=0.05):
        return (scale * jax.random.normal(k, shape)).astype(jnp.float32)

    ks = iter(jax.random.split(key, 20))
    p = {}
    p["w_proj"] = lin(next(ks), (D, F)); p["b_proj"] = lin(next(ks), (1, F))
    p["w_h0"] = lin(next(ks), (H, F));   p["b_h0"] = lin(next(ks), (1, F))
    p["w_h1"] = lin(next(ks), (H, H));   p["b_h1"] = lin(next(ks), (1, H))
    # LSTMCell(F*2 + H, H): input rows ordered [proj_pre | weighted_img | weighted_ctx]
    p["w_ih"] = lin(next(ks), (2 * F + H, 4 * H)); p["b_ih"] = lin(next(ks), (1, 4 * H))
    p["w_hh"] = lin(next(ks), (H, 4 * H));         p["b_hh"] = lin(next(ks), (1, 4 * H))
    # logit_fc: Linear(2H, F), rows ordered [weighted_ctx | h1]
    p["w_logit"] = lin(next(ks), (2 * H, F)); p["b_l"] = lin(next(ks), (1, F))
    # h2_fc_lstm: Linear(H + F, H), rows ordered [h0 | weighted_img]
    p["w_h2"] = lin(next(ks), (H + F, H)); p["b_h2"] = lin(next(ks), (1, H))
    # critic_fc: Linear(T + H, 1), rows ordered [ctx_attn | h1_value]
    p["w_c"] = lin(next(ks), (T + H, 1)); p["b_c"] = lin(next(ks), (1, 1))
    # critic_valueDiff_fc: Linear(1, 2)
    p["w_vd"] = lin(next(ks), (1, 2)); p["b_vd"] = lin(next(ks), (1, 2))
    # move_fc: Linear(F, F + TL), output split [F | TL]
    p["w_move"] = lin(next(ks), (F, F + TL)); p["b_move"] = lin(next(ks), (1, F + TL))
    return p


def pack_params(p):
    """Pack all parameters into one weight slab and one bias slab (done once)."""
    w = jnp.zeros((W_ROWS, LANE), jnp.float32)
    # fused block-diagonal A: proj / h0_fc / h1_fc + bias row 127
    w = w.at[0:D, 0:F].set(p["w_proj"])
    w = w.at[D:D + H, F:2 * F].set(p["w_h0"])
    w = w.at[D + H:D + 2 * H, 2 * F:2 * F + H].set(p["w_h1"])
    w = w.at[R_A_BIAS, 0:F].set(p["b_proj"][0])
    w = w.at[R_A_BIAS, F:2 * F].set(p["b_h0"][0])
    w = w.at[R_A_BIAS, 2 * F:2 * F + H].set(p["b_h1"][0])
    # LSTM: [W_ih(pre|img|ctx) ; W_hh]
    w = w.at[R_LSTM:R_LSTM + 2 * F + H, 0:4 * H].set(p["w_ih"])
    w = w.at[R_LSTM + 2 * F + H:R_LSTM + 2 * F + 2 * H, 0:4 * H].set(p["w_hh"])
    # logit_fc / h2_fc_lstm / move_fc
    w = w.at[R_LOGIT:R_LOGIT + 2 * H, 0:F].set(p["w_logit"])
    w = w.at[R_H2:R_H2 + H + F, 0:H].set(p["w_h2"])
    w = w.at[R_MOVE:R_MOVE + F, 0:F + TL].set(p["w_move"])

    b = jnp.zeros((B_ROWS, LANE), jnp.float32)
    b = b.at[BR_LSTM, 0:4 * H].set(p["b_ih"][0] + p["b_hh"][0])
    b = b.at[BR_LOGIT, 0:F].set(p["b_l"][0])
    b = b.at[BR_H2, 0:H].set(p["b_h2"][0])
    b = b.at[BR_CRITIC, CC_WC_ATTN:CC_WC_ATTN + T].set(p["w_c"][:T, 0])
    b = b.at[BR_CRITIC, CC_WC_VAL:CC_WC_VAL + H].set(p["w_c"][T:, 0])
    b = b.at[BR_CRITIC, CC_B_C].set(p["b_c"][0, 0])
    b = b.at[BR_CRITIC, CC_W_VD:CC_W_VD + 2].set(p["w_vd"][0])
    b = b.at[BR_CRITIC, CC_B_VD:CC_B_VD + 2].set(p["b_vd"][0])
    b = b.at[BR_MOVE, 0:F + TL].set(p["b_move"][0])
    return w, b


def positional_encoding_table_np(seq_len, d_model):
    pe = np.zeros((seq_len, d_model), dtype=np.float32)
    position = np.arange(0, seq_len, dtype=np.float32)[:, None]
    div_term = np.exp(np.arange(0, d_model, 2, dtype=np.float32)
                      * -(math.log(10000.0) / d_model))
    pe[:, 0::2] = np.sin(position * div_term)
    pe[:, 1::2] = np.cos(position * div_term)
    return pe


_PE_NP = positional_encoding_table_np(T, H)


# ------------------------------- wrapper ---------------------------------------
@jax.jit
def _regretful_call(w_slab, b_slab, navigable_feat, pre_feat, pre_value,
                    h_0, c_0, ctx, meta):
    """Packs per-group activation slabs on device, runs the gridded kernel.

    meta: float32 (3, G*B) rows = [rollback_idx+1, seq_lengths, index_length].
    """
    navf = navigable_feat.reshape(G, B, N, D + TL)
    h0g = h_0.reshape(G, B, H)
    ctx_pos = (ctx + jnp.asarray(_PE_NP)[None, :, :]).reshape(G, B * T, H)
    meta_g = meta.reshape(3, G, B)

    x = jnp.zeros((G, X_ROWS, LANE), jnp.float32)
    # fused-A LHS rows
    x = x.at[:, 0:B * N, 0:D].set(navf[..., :D].reshape(G, B * N, D))
    x = x.at[:, B * N:B * N + B, 0:D].set(pre_feat.reshape(G, B, D + TL)[..., :D])
    x = x.at[:, B * N + B:B * N + 2 * B, F:2 * F].set(h0g)          # h0 for h0_fc
    x = x.at[:, B * N + 2 * B:B * N + 3 * B, 2 * F:2 * F + H].set(h0g)  # h0 for h1_fc
    x = x.at[:, 0:A_ROWS, XC_ONE].set(1.0)                          # bias-ones column
    # ctx (+PE), visited markers
    x = x.at[:, XR_CTX:XR_CTX + B * T, 0:H].set(ctx_pos)
    x = x.at[:, XR_NAVVIS:XR_NAVVIS + B * N, 0:TL].set(
        navf[..., D:].reshape(G, B * N, TL))
    # per-row state & scalars
    x = x.at[:, XR_ACTS:XR_ACTS + B, XC_H0:XC_H0 + H].set(h0g)
    x = x.at[:, XR_ACTS:XR_ACTS + B, XC_C0:XC_C0 + H].set(c_0.reshape(G, B, H))
    x = x.at[:, XR_ACTS:XR_ACTS + B, XC_PVAL].set(pre_value.reshape(G, B))
    x = x.at[:, XR_ACTS:XR_ACTS + B, XC_RB].set(meta_g[0])
    x = x.at[:, XR_ACTS:XR_ACTS + B, XC_SEQ].set(meta_g[1])
    x = x.at[:, XR_ACTS:XR_ACTS + B, XC_IDXLEN].set(meta_g[2])
    x_slab = x.reshape(G * X_ROWS, LANE)

    fn = pl.pallas_call(
        regretful_kernel,
        out_shape=jax.ShapeDtypeStruct((G * B, LANE), jnp.float32),
        grid=(G,),
        in_specs=[
            pl.BlockSpec((X_ROWS, LANE), lambda g: (g, 0)),   # per-group activations
            pl.BlockSpec((W_ROWS, LANE), lambda g: (0, 0)),   # weight slab (resident)
            pl.BlockSpec((B_ROWS, LANE), lambda g: (0, 0)),   # bias slab (resident)
        ],
        out_specs=pl.BlockSpec((B, LANE), lambda g: (g, 0)),
        compiler_params=pltpu.CompilerParams(
            dimension_semantics=("parallel",)),   # shards groups across v7x's 2 TCs
    )
    return fn(x_slab, w_slab, b_slab)


def regretful_forward(packed_params, img_feat, navigable_feat, pre_feat,
                      pre_value, h_0, c_0, ctx, navigable_index,
                      navigable_idx_to_previous, seq_lengths):
    w_slab, b_slab = packed_params
    batch_size = img_feat.shape[0]
    assert batch_size == G * B

    # Only three tiny per-row scalars cross host->device; masks / one-hot are
    # built inside the kernel with vectorized iota compares.
    index_length = np.array([len(idx) + 1 for idx in navigable_index], np.float32)
    meta = jnp.asarray(np.stack([
        np.array(navigable_idx_to_previous, np.float32) + 1.0,
        np.array(seq_lengths, np.float32),
        index_length,
    ]))  # (3, G*B)
    # TODO(synk): prevent_rollback / prevent_oscillation mask surgery is host-side
    # Python list logic in the original; not mapped into the kernel.

    out = _regretful_call(w_slab, b_slab, navigable_feat, pre_feat, pre_value,
                          h_0, c_0, ctx, meta)

    h_1 = out[:, OC_H1:OC_H1 + H]
    c_1 = out[:, OC_C1:OC_C1 + H]
    img_attn = out[:, OC_IMG:OC_IMG + N]
    ctx_attn = out[:, OC_CTX:OC_CTX + T]
    logit = out[:, OC_LOGIT:OC_LOGIT + N]
    rb_attn = out[:, OC_RB_ATTN:OC_RB_ATTN + 2]
    rb_logit = out[:, OC_RB_LOGIT:OC_RB_LOGIT + 2]
    value = out[:, OC_VALUE:OC_VALUE + 1]
    navigable_mask = out[:, OC_NMASK:OC_NMASK + N]

    return (h_1, c_1, img_attn, ctx_attn, rb_attn, logit, rb_logit, value,
            navigable_mask)


# --------------------------------- main -----------------------------------------
if __name__ == "__main__":
    key = jax.random.PRNGKey(0)
    k_inp, k_par = jax.random.split(key)
    packed_params = pack_params(init_params(k_par))

    BT = G * B  # total batch rows
    ks = jax.random.split(k_inp, 7)
    img_feat = jax.random.normal(ks[0], (BT, NUM_IMGS, D + TL), jnp.float32)
    navigable_feat = jax.random.normal(ks[1], (BT, N, D + TL), jnp.float32)
    pre_feat = jax.random.normal(ks[2], (BT, D + TL), jnp.float32)
    pre_value = jax.random.normal(ks[3], (BT, 1), jnp.float32)
    h_0 = jax.random.normal(ks[4], (BT, H), jnp.float32)
    c_0 = jax.random.normal(ks[5], (BT, H), jnp.float32)
    ctx = jax.random.normal(ks[6], (BT, T, H), jnp.float32)

    navigable_index = [[0, 1, 2], [0, 1, 2, 3, 4]] * (BT // 2)
    navigable_idx_to_previous = [1, 2] * (BT // 2)
    seq_lengths = [T, 6] * (BT // 2)

    outs = regretful_forward(packed_params, img_feat, navigable_feat, pre_feat,
                             pre_value, h_0, c_0, ctx, navigable_index,
                             navigable_idx_to_previous, seq_lengths)
    outs = jax.block_until_ready(outs)
    assert all(bool(jnp.all(jnp.isfinite(o))) for o in outs)
    print("KERNEL_OK")
</pallas_src>

<mosaic_0001>
module attributes {stable_mosaic.version = 11 : i64} {
  func.func @regretful_kernel(%arg0: i32, %arg1: memref<224x128xf32, #tpu.memory_space<vmem>>, %arg2: memref<416x128xf32, #tpu.memory_space<vmem>>, %arg3: memref<8x128xf32, #tpu.memory_space<vmem>>, %arg4: memref<8x128xf32, #tpu.memory_space<vmem>>) attributes {dimension_semantics = [#tpu.dimension_semantics<parallel>], iteration_bounds = array<i64: 2>, scalar_prefetch = 0 : i64, scratch_operands = 0 : i64, tpu.core_type = #tpu.core_type<tc>, window_params = [{transform_indices = @transform_0, window_bounds = array<i64: 224, 128>}, {pipeline_mode = #tpu.pipeline_mode<synchronous>, transform_indices = @transform_1, window_bounds = array<i64: 416, 128>}, {pipeline_mode = #tpu.pipeline_mode<synchronous>, transform_indices = @transform_2, window_bounds = array<i64: 8, 128>}, {transform_indices = @transform_3, window_bounds = array<i64: 8, 128>}]} {
    %c216 = arith.constant 216 : index
    %c0 = arith.constant 0 : index
    %0 = vector.load %arg1[%c216, %c0] : memref<224x128xf32, #tpu.memory_space<vmem>>, vector<8x128xf32>
    %1 = vector.extract_strided_slice %0 {offsets = [0, 0], sizes = [8, 32], strides = [1, 1]} : vector<8x128xf32> to vector<8x32xf32>
    %2 = vector.extract_strided_slice %0 {offsets = [0, 32], sizes = [8, 32], strides = [1, 1]} : vector<8x128xf32> to vector<8x32xf32>
    %3 = vector.extract_strided_slice %0 {offsets = [0, 64], sizes = [8, 1], strides = [1, 1]} : vector<8x128xf32> to vector<8x1xf32>
    %4 = vector.extract_strided_slice %0 {offsets = [0, 65], sizes = [8, 1], strides = [1, 1]} : vector<8x128xf32> to vector<8x1xf32>
    %5 = vector.extract_strided_slice %0 {offsets = [0, 66], sizes = [8, 1], strides = [1, 1]} : vector<8x128xf32> to vector<8x1xf32>
    %6 = vector.extract_strided_slice %0 {offsets = [0, 67], sizes = [8, 1], strides = [1, 1]} : vector<8x128xf32> to vector<8x1xf32>
    %7 = tpu.iota {dimensions = array<i32: 1>} : vector<1x8xi32>
    %8 = arith.sitofp %7 : vector<1x8xi32> to vector<1x8xf32>
    %9 = tpu.iota {dimensions = array<i32: 1>} : vector<1x8xi32>
    %10 = arith.sitofp %9 : vector<1x8xi32> to vector<1x8xf32>
    %11 = vector.broadcast %8 : vector<1x8xf32> to vector<8x8xf32>
    %12 = vector.broadcast %5 : vector<8x1xf32> to vector<8x8xf32>
    %13 = arith.cmpf olt, %11, %12 : vector<8x8xf32>
    %14 = arith.extui %13 : vector<8x8xi1> to vector<8x8xi32>
    %15 = arith.sitofp %14 : vector<8x8xi32> to vector<8x8xf32>
    %16 = vector.broadcast %10 : vector<1x8xf32> to vector<8x8xf32>
    %17 = vector.broadcast %4 : vector<8x1xf32> to vector<8x8xf32>
    %18 = arith.cmpf olt, %16, %17 : vector<8x8xf32>
    %19 = arith.extui %18 : vector<8x8xi1> to vector<8x8xi32>
    %20 = arith.sitofp %19 : vector<8x8xi32> to vector<8x8xf32>
    %21 = vector.broadcast %8 : vector<1x8xf32> to vector<8x8xf32>
    %22 = vector.broadcast %6 : vector<8x1xf32> to vector<8x8xf32>
    %23 = arith.cmpf oeq, %21, %22 : vector<8x8xf32>
    %24 = arith.extui %23 : vector<8x8xi1> to vector<8x8xi32>
    %25 = arith.sitofp %24 : vector<8x8xi32> to vector<8x8xf32>
    %c0_0 = arith.constant 0 : index
    %c0_1 = arith.constant 0 : index
    %26 = vector.load %arg1[%c0_0, %c0_1] : memref<224x128xf32, #tpu.memory_space<vmem>>, vector<88x128xf32>
    %c0_2 = arith.constant 0 : index
    %c0_3 = arith.constant 0 : index
    %27 = vector.load %arg2[%c0_2, %c0_3] : memref<416x128xf32, #tpu.memory_space<vmem>>, vector<128x128xf32>
    %cst = arith.constant dense<0.000000e+00> : vector<88x128xf32>
    %28 = tpu.matmul %26, %27, %cst {dimension_numbers = #tpu.dot_dimension_numbers<[1], [0], [0], [1], [0, 0, 1, 1], [], []>} : vector<88x128xf32>, vector<128x128xf32>, vector<88x128xf32> -> vector<88x128xf32>
    %29 = vector.extract_strided_slice %28 {offsets = [0, 0], sizes = [72, 32], strides = [1, 1]} : vector<88x128xf32> to vector<72x32xf32>
    %cst_4 = arith.constant 0.000000e+00 : f32
    %30 = vector.broadcast %cst_4 : f32 to vector<72x32xf32>
    %31 = arith.maximumf %29, %30 : vector<72x32xf32>
    %32 = vector.extract_strided_slice %31 {offsets = [0, 0], sizes = [64, 32], strides = [1, 1]} : vector<72x32xf32> to vector<64x32xf32>
    %33 = vector.shape_cast %32 : vector<64x32xf32> to vector<8x8x32xf32>
    %34 = vector.shape_cast %15 : vector<8x8xf32> to vector<8x8x1xf32>
    %35 = vector.broadcast %34 : vector<8x8x1xf32> to vector<8x8x32xf32>
    %36 = arith.mulf %33, %35 : vector<8x8x32xf32>
    %37 = vector.extract_strided_slice %31 {offsets = [64, 0], sizes = [8, 32], strides = [1, 1]} : vector<72x32xf32> to vector<8x32xf32>
    %38 = vector.extract_strided_slice %28 {offsets = [72, 32], sizes = [8, 32], strides = [1, 1]} : vector<88x128xf32> to vector<8x32xf32>
    %39 = vector.extract_strided_slice %28 {offsets = [80, 64], sizes = [8, 32], strides = [1, 1]} : vector<88x128xf32> to vector<8x32xf32>
    %40 = vector.shape_cast %38 : vector<8x32xf32> to vector<8x1x32xf32>
    %41 = vector.broadcast %40 : vector<8x1x32xf32> to vector<8x8x32xf32>
    %42 = arith.mulf %36, %41 : vector<8x8x32xf32>
    %cst_5 = arith.constant dense<0.000000e+00> : vector<8x8xf32>
    %43 = vector.multi_reduction <add>, %42, %cst_5 [2] : vector<8x8x32xf32> to vector<8x8xf32>
    %cst_6 = arith.constant 0.000000e+00 : f32
    %44 = vector.broadcast %cst_6 : f32 to vector<8x8xf32>
    %45 = arith.cmpf oeq, %15, %44 : vector<8x8xf32>
    %cst_7 = arith.constant -1.000000e+30 : f32
    %46 = vector.broadcast %cst_7 : f32 to vector<8x8xf32>
    %47 = arith.select %45, %46, %43 : vector<8x8xi1>, vector<8x8xf32>
    %cst_8 = arith.constant dense<0xFF800000> : vector<8xf32>
    %48 = vector.multi_reduction <maximumf>, %47, %cst_8 [1] : vector<8x8xf32> to vector<8xf32>
    %49 = vector.shape_cast %48 : vector<8xf32> to vector<8x1xf32>
    %50 = vector.broadcast %49 : vector<8x1xf32> to vector<8x8xf32>
    %51 = arith.subf %47, %50 : vector<8x8xf32>
    %52 = math.exp %51 : vector<8x8xf32>
    %cst_9 = arith.constant dense<0.000000e+00> : vector<8xf32>
    %53 = vector.multi_reduction <add>, %52, %cst_9 [1] : vector<8x8xf32> to vector<8xf32>
    %54 = vector.shape_cast %53 : vector<8xf32> to vector<8x1xf32>
    %55 = tpu.reciprocal %54 {approx = true} : vector<8x1xf32> -> vector<8x1xf32>
    %56 = vector.broadcast %55 : vector<8x1xf32> to vector<8x8xf32>
    %57 = arith.mulf %52, %56 : vector<8x8xf32>
    %58 = vector.shape_cast %57 : vector<8x8xf32> to vector<8x8x1xf32>
    %59 = vector.broadcast %58 : vector<8x8x1xf32> to vector<8x8x32xf32>
    %60 = arith.mulf %59, %36 : vector<8x8x32xf32>
    %cst_10 = arith.constant dense<0.000000e+00> : vector<8x32xf32>
    %61 = vector.multi_reduction <add>, %60, %cst_10 [1] : vector<8x8x32xf32> to vector<8x32xf32>
    %c88 = arith.constant 88 : index
    %c0_11 = arith.constant 0 : index
    %62 = vector.load %arg1[%c88, %c0_11] : memref<224x128xf32, #tpu.memory_space<vmem>>, vector<64x32xf32>
    %63 = vector.shape_cast %62 : vector<64x32xf32> to vector<8x8x32xf32>
    %64 = vector.shape_cast %39 : vector<8x32xf32> to vector<8x1x32xf32>
    %65 = vector.broadcast %64 : vector<8x1x32xf32> to vector<8x8x32xf32>
    %66 = arith.mulf %63, %65 : vector<8x8x32xf32>
    %cst_12 = arith.constant dense<0.000000e+00> : vector<8x8xf32>
    %67 = vector.multi_reduction <add>, %66, %cst_12 [2] : vector<8x8x32xf32> to vector<8x8xf32>
    %cst_13 = arith.constant 0.000000e+00 : f32
    %68 = vector.broadcast %cst_13 : f32 to vector<8x8xf32>
    %69 = arith.cmpf oeq, %20, %68 : vector<8x8xf32>
    %cst_14 = arith.constant -1.000000e+30 : f32
    %70 = vector.broadcast %cst_14 : f32 to vector<8x8xf32>
    %71 = arith.select %69, %70, %67 : vector<8x8xi1>, vector<8x8xf32>
    %cst_15 = arith.constant dense<0xFF800000> : vector<8xf32>
    %72 = vector.multi_reduction <maximumf>, %71, %cst_15 [1] : vector<8x8xf32> to vector<8xf32>
    %73 = vector.shape_cast %72 : vector<8xf32> to vector<8x1xf32>
    %74 = vector.broadcast %73 : vector<8x1xf32> to vector<8x8xf32>
    %75 = arith.subf %71, %74 : vector<8x8xf32>
    %76 = math.exp %75 : vector<8x8xf32>
    %cst_16 = arith.constant dense<0.000000e+00> : vector<8xf32>
    %77 = vector.multi_reduction <add>, %76, %cst_16 [1] : vector<8x8xf32> to vector<8xf32>
    %78 = vector.shape_cast %77 : vector<8xf32> to vector<8x1xf32>
    %79 = tpu.reciprocal %78 {approx = true} : vector<8x1xf32> -> vector<8x1xf32>
    %80 = vector.broadcast %79 : vector<8x1xf32> to vector<8x8xf32>
    %81 = arith.mulf %76, %80 : vector<8x8xf32>
    %82 = vector.shape_cast %81 : vector<8x8xf32> to vector<8x8x1xf32>
    %83 = vector.broadcast %82 : vector<8x8x1xf32> to vector<8x8x32xf32>
    %84 = arith.mulf %83, %63 : vector<8x8x32xf32>
    %cst_17 = arith.constant dense<0.000000e+00> : vector<8x32xf32>
    %85 = vector.multi_reduction <add>, %84, %cst_17 [1] : vector<8x8x32xf32> to vector<8x32xf32>
    %c128 = arith.constant 128 : index
    %c0_18 = arith.constant 0 : index
    %86 = vector.load %arg2[%c128, %c0_18] : memref<416x128xf32, #tpu.memory_space<vmem>>, vector<32x128xf32>
    %cst_19 = arith.constant dense<0.000000e+00> : vector<8x128xf32>
    %87 = tpu.matmul %37, %86, %cst_19 {dimension_numbers = #tpu.dot_dimension_numbers<[1], [0], [0], [1], [0, 0, 1, 1], [], []>} : vector<8x32xf32>, vector<32x128xf32>, vector<8x128xf32> -> vector<8x128xf32>
    %c160 = arith.constant 160 : index
    %c0_20 = arith.constant 0 : index
    %88 = vector.load %arg2[%c160, %c0_20] : memref<416x128xf32, #tpu.memory_space<vmem>>, vector<32x128xf32>
    %cst_21 = arith.constant dense<0.000000e+00> : vector<8x128xf32>
    %89 = tpu.matmul %61, %88, %cst_21 {dimension_numbers = #tpu.dot_dimension_numbers<[1], [0], [0], [1], [0, 0, 1, 1], [], []>} : vector<8x32xf32>, vector<32x128xf32>, vector<8x128xf32> -> vector<8x128xf32>
    %90 = arith.addf %87, %89 : vector<8x128xf32>
    %c192 = arith.constant 192 : index
    %c0_22 = arith.constant 0 : index
    %91 = vector.load %arg2[%c192, %c0_22] : memref<416x128xf32, #tpu.memory_space<vmem>>, vector<32x128xf32>
    %cst_23 = arith.constant dense<0.000000e+00> : vector<8x128xf32>
    %92 = tpu.matmul %85, %91, %cst_23 {dimension_numbers = #tpu.dot_dimension_numbers<[1], [0], [0], [1], [0, 0, 1, 1], [], []>} : vector<8x32xf32>, vector<32x128xf32>, vector<8x128xf32> -> vector<8x128xf32>
    %93 = arith.addf %90, %92 : vector<8x128xf32>
    %c224 = arith.constant 224 : index
    %c0_24 = arith.constant 0 : index
    %94 = vector.load %arg2[%c224, %c0_24] : memref<416x128xf32, #tpu.memory_space<vmem>>, vector<32x128xf32>
    %cst_25 = arith.constant dense<0.000000e+00> : vector<8x128xf32>
    %95 = tpu.matmul %1, %94, %cst_25 {dimension_numbers = #tpu.dot_dimension_numbers<[1], [0], [0], [1], [0, 0, 1, 1], [], []>} : vector<8x32xf32>, vector<32x128xf32>, vector<8x128xf32> -> vector<8x128xf32>
    %96 = arith.addf %93, %95 : vector<8x128xf32>
    %c0_26 = arith.constant 0 : index
    %c0_27 = arith.constant 0 : index
    %97 = vector.load %arg3[%c0_26, %c0_27] : memref<8x128xf32, #tpu.memory_space<vmem>>, vector<1x128xf32>
    %98 = vector.broadcast %97 : vector<1x128xf32> to vector<8x128xf32>
    %99 = arith.addf %96, %98 : vector<8x128xf32>
    %100 = vector.extract_strided_slice %99 {offsets = [0, 0], sizes = [8, 32], strides = [1, 1]} : vector<8x128xf32> to vector<8x32xf32>
    %101 = arith.negf %100 : vector<8x32xf32>
    %102 = math.exp %101 : vector<8x32xf32>
    %cst_28 = arith.constant 1.000000e+00 : f32
    %103 = vector.broadcast %cst_28 : f32 to vector<8x32xf32>
    %104 = arith.addf %103, %102 : vector<8x32xf32>
    %105 = arith.divf %103, %104 : vector<8x32xf32>
    %106 = vector.extract_strided_slice %99 {offsets = [0, 32], sizes = [8, 32], strides = [1, 1]} : vector<8x128xf32> to vector<8x32xf32>
    %107 = arith.negf %106 : vector<8x32xf32>
    %108 = math.exp %107 : vector<8x32xf32>
    %cst_29 = arith.constant 1.000000e+00 : f32
    %109 = vector.broadcast %cst_29 : f32 to vector<8x32xf32>
    %110 = arith.addf %109, %108 : vector<8x32xf32>
    %111 = arith.divf %109, %110 : vector<8x32xf32>
    %112 = vector.extract_strided_slice %99 {offsets = [0, 64], sizes = [8, 32], strides = [1, 1]} : vector<8x128xf32> to vector<8x32xf32>
    %113 = math.tanh %112 : vector<8x32xf32>
    %114 = vector.extract_strided_slice %99 {offsets = [0, 96], sizes = [8, 32], strides = [1, 1]} : vector<8x128xf32> to vector<8x32xf32>
    %115 = arith.negf %114 : vector<8x32xf32>
    %116 = math.exp %115 : vector<8x32xf32>
    %cst_30 = arith.constant 1.000000e+00 : f32
    %117 = vector.broadcast %cst_30 : f32 to vector<8x32xf32>
    %118 = arith.addf %117, %116 : vector<8x32xf32>
    %119 = arith.divf %117, %118 : vector<8x32xf32>
    %120 = arith.mulf %111, %2 : vector<8x32xf32>
    %121 = arith.mulf %105, %113 : vector<8x32xf32>
    %122 = arith.addf %120, %121 : vector<8x32xf32>
    %123 = math.tanh %122 : vector<8x32xf32>
    %124 = arith.mulf %119, %123 : vector<8x32xf32>
    %c256 = arith.constant 256 : index
    %c0_31 = arith.constant 0 : index
    %125 = vector.load %arg2[%c256, %c0_31] : memref<416x128xf32, #tpu.memory_space<vmem>>, vector<32x128xf32>
    %cst_32 = arith.constant dense<0.000000e+00> : vector<8x128xf32>
    %126 = tpu.matmul %85, %125, %cst_32 {dimension_numbers = #tpu.dot_dimension_numbers<[1], [0], [0], [1], [0, 0, 1, 1], [], []>} : vector<8x32xf32>, vector<32x128xf32>, vector<8x128xf32> -> vector<8x128xf32>
    %c288 = arith.constant 288 : index
    %c0_33 = arith.constant 0 : index
    %127 = vector.load %arg2[%c288, %c0_33] : memref<416x128xf32, #tpu.memory_space<vmem>>, vector<32x128xf32>
    %cst_34 = arith.constant dense<0.000000e+00> : vector<8x128xf32>
    %128 = tpu.matmul %124, %127, %cst_34 {dimension_numbers = #tpu.dot_dimension_numbers<[1], [0], [0], [1], [0, 0, 1, 1], [], []>} : vector<8x32xf32>, vector<32x128xf32>, vector<8x128xf32> -> vector<8x128xf32>
    %129 = arith.addf %126, %128 : vector<8x128xf32>
    %c1 = arith.constant 1 : index
    %c0_35 = arith.constant 0 : index
    %130 = vector.load %arg3[%c1, %c0_35] : memref<8x128xf32, #tpu.memory_space<vmem>>, vector<1x128xf32>
    %131 = vector.broadcast %130 : vector<1x128xf32> to vector<8x128xf32>
    %132 = arith.addf %129, %131 : vector<8x128xf32>
    %133 = vector.extract_strided_slice %132 {offsets = [0, 0], sizes = [8, 32], strides = [1, 1]} : vector<8x128xf32> to vector<8x32xf32>
    %134 = vector.shape_cast %25 : vector<8x8xf32> to vector<8x8x1xf32>
    %135 = vector.broadcast %134 : vector<8x8x1xf32> to vector<8x8x32xf32>
    %136 = arith.mulf %135, %36 : vector<8x8x32xf32>
    %cst_36 = arith.constant dense<0.000000e+00> : vector<8x32xf32>
    %137 = vector.multi_reduction <add>, %136, %cst_36 [1] : vector<8x8x32xf32> to vector<8x32xf32>
    %c320 = arith.constant 320 : index
    %c0_37 = arith.constant 0 : index
    %138 = vector.load %arg2[%c320, %c0_37] : memref<416x128xf32, #tpu.memory_space<vmem>>, vector<32x128xf32>
    %cst_38 = arith.constant dense<0.000000e+00> : vector<8x128xf32>
    %139 = tpu.matmul %1, %138, %cst_38 {dimension_numbers = #tpu.dot_dimension_numbers<[1], [0], [0], [1], [0, 0, 1, 1], [], []>} : vector<8x32xf32>, vector<32x128xf32>, vector<8x128xf32> -> vector<8x128xf32>
    %c352 = arith.constant 352 : index
    %c0_39 = arith.constant 0 : index
    %140 = vector.load %arg2[%c352, %c0_39] : memref<416x128xf32, #tpu.memory_space<vmem>>, vector<32x128xf32>
    %cst_40 = arith.constant dense<0.000000e+00> : vector<8x128xf32>
    %141 = tpu.matmul %61, %140, %cst_40 {dimension_numbers = #tpu.dot_dimension_numbers<[1], [0], [0], [1], [0, 0, 1, 1], [], []>} : vector<8x32xf32>, vector<32x128xf32>, vector<8x128xf32> -> vector<8x128xf32>
    %142 = arith.addf %139, %141 : vector<8x128xf32>
    %c2 = arith.constant 2 : index
    %c0_41 = arith.constant 0 : index
    %143 = vector.load %arg3[%c2, %c0_41] : memref<8x128xf32, #tpu.memory_space<vmem>>, vector<1x128xf32>
    %144 = vector.broadcast %143 : vector<1x128xf32> to vector<8x128xf32>
    %145 = arith.addf %142, %144 : vector<8x128xf32>
    %146 = vector.extract_strided_slice %145 {offsets = [0, 0], sizes = [8, 32], strides = [1, 1]} : vector<8x128xf32> to vector<8x32xf32>
    %147 = arith.negf %146 : vector<8x32xf32>
    %148 = math.exp %147 : vector<8x32xf32>
    %cst_42 = arith.constant 1.000000e+00 : f32
    %149 = vector.broadcast %cst_42 : f32 to vector<8x32xf32>
    %150 = arith.addf %149, %148 : vector<8x32xf32>
    %151 = arith.divf %149, %150 : vector<8x32xf32>
    %152 = math.tanh %122 : vector<8x32xf32>
    %153 = arith.mulf %151, %152 : vector<8x32xf32>
    %c3 = arith.constant 3 : index
    %c0_43 = arith.constant 0 : index
    %154 = vector.load %arg3[%c3, %c0_43] : memref<8x128xf32, #tpu.memory_space<vmem>>, vector<1x128xf32>
    %155 = vector.extract_strided_slice %154 {offsets = [0, 0], sizes = [1, 8], strides = [1, 1]} : vector<1x128xf32> to vector<1x8xf32>
    %156 = vector.broadcast %155 : vector<1x8xf32> to vector<8x8xf32>
    %157 = arith.mulf %81, %156 : vector<8x8xf32>
    %cst_44 = arith.constant dense<0.000000e+00> : vector<8xf32>
    %158 = vector.multi_reduction <add>, %157, %cst_44 [1] : vector<8x8xf32> to vector<8xf32>
    %159 = vector.shape_cast %158 : vector<8xf32> to vector<8x1xf32>
    %160 = vector.extract_strided_slice %154 {offsets = [0, 8], sizes = [1, 32], strides = [1, 1]} : vector<1x128xf32> to vector<1x32xf32>
    %161 = vector.broadcast %160 : vector<1x32xf32> to vector<8x32xf32>
    %162 = arith.mulf %153, %161 : vector<8x32xf32>
    %cst_45 = arith.constant dense<0.000000e+00> : vector<8xf32>
    %163 = vector.multi_reduction <add>, %162, %cst_45 [1] : vector<8x32xf32> to vector<8xf32>
    %164 = vector.shape_cast %163 : vector<8xf32> to vector<8x1xf32>
    %165 = arith.addf %159, %164 : vector<8x1xf32>
    %166 = vector.extract_strided_slice %154 {offsets = [0, 40], sizes = [1, 1], strides = [1, 1]} : vector<1x128xf32> to vector<1x1xf32>
    %167 = vector.broadcast %166 : vector<1x1xf32> to vector<8x1xf32>
    %168 = arith.addf %165, %167 : vector<8x1xf32>
    %169 = math.tanh %168 : vector<8x1xf32>
    %c152 = arith.constant 152 : index
    %c0_46 = arith.constant 0 : index
    %170 = vector.load %arg1[%c152, %c0_46] : memref<224x128xf32, #tpu.memory_space<vmem>>, vector<64x8xf32>
    %171 = vector.shape_cast %170 : vector<64x8xf32> to vector<8x8x8xf32>
    %172 = vector.shape_cast %169 : vector<8x1xf32> to vector<8x1x1xf32>
    %173 = vector.shape_cast %15 : vector<8x8xf32> to vector<8x8x1xf32>
    %174 = vector.broadcast %172 : vector<8x1x1xf32> to vector<8x8x1xf32>
    %175 = arith.mulf %174, %173 : vector<8x8x1xf32>
    %176 = vector.broadcast %175 : vector<8x8x1xf32> to vector<8x8x8xf32>
    %177 = arith.subf %176, %171 : vector<8x8x8xf32>
    %178 = arith.subf %169, %3 : vector<8x1xf32>
    %179 = vector.extract_strided_slice %154 {offsets = [0, 41], sizes = [1, 2], strides = [1, 1]} : vector<1x128xf32> to vector<1x2xf32>
    %180 = vector.broadcast %178 : vector<8x1xf32> to vector<8x2xf32>
    %181 = vector.broadcast %179 : vector<1x2xf32> to vector<8x2xf32>
    %182 = arith.mulf %180, %181 : vector<8x2xf32>
    %183 = vector.extract_strided_slice %154 {offsets = [0, 43], sizes = [1, 2], strides = [1, 1]} : vector<1x128xf32> to vector<1x2xf32>
    %184 = vector.broadcast %183 : vector<1x2xf32> to vector<8x2xf32>
    %185 = arith.addf %182, %184 : vector<8x2xf32>
    %cst_47 = arith.constant dense<0xFF800000> : vector<8xf32>
    %186 = vector.multi_reduction <maximumf>, %185, %cst_47 [1] : vector<8x2xf32> to vector<8xf32>
    %187 = vector.shape_cast %186 : vector<8xf32> to vector<8x1xf32>
    %188 = vector.broadcast %187 : vector<8x1xf32> to vector<8x2xf32>
    %189 = arith.subf %185, %188 : vector<8x2xf32>
    %190 = math.exp %189 : vector<8x2xf32>
    %cst_48 = arith.constant dense<0.000000e+00> : vector<8xf32>
    %191 = vector.multi_reduction <add>, %190, %cst_48 [1] : vector<8x2xf32> to vector<8xf32>
    %192 = vector.shape_cast %191 : vector<8xf32> to vector<8x1xf32>
    %193 = tpu.reciprocal %192 {approx = true} : vector<8x1xf32> -> vector<8x1xf32>
    %194 = vector.broadcast %193 : vector<8x1xf32> to vector<8x2xf32>
    %195 = arith.mulf %190, %194 : vector<8x2xf32>
    %196 = vector.extract_strided_slice %195 {offsets = [0, 0], sizes = [8, 1], strides = [1, 1]} : vector<8x2xf32> to vector<8x1xf32>
    %197 = vector.broadcast %196 : vector<8x1xf32> to vector<8x32xf32>
    %198 = arith.mulf %197, %137 : vector<8x32xf32>
    %199 = vector.extract_strided_slice %195 {offsets = [0, 1], sizes = [8, 1], strides = [1, 1]} : vector<8x2xf32> to vector<8x1xf32>
    %200 = vector.broadcast %199 : vector<8x1xf32> to vector<8x32xf32>
    %201 = arith.mulf %200, %133 : vector<8x32xf32>
    %202 = arith.addf %198, %201 : vector<8x32xf32>
    %c384 = arith.constant 384 : index
    %c0_49 = arith.constant 0 : index
    %203 = vector.load %arg2[%c384, %c0_49] : memref<416x128xf32, #tpu.memory_space<vmem>>, vector<32x128xf32>
    %cst_50 = arith.constant dense<0.000000e+00> : vector<8x128xf32>
    %204 = tpu.matmul %202, %203, %cst_50 {dimension_numbers = #tpu.dot_dimension_numbers<[1], [0], [0], [1], [0, 0, 1, 1], [], []>} : vector<8x32xf32>, vector<32x128xf32>, vector<8x128xf32> -> vector<8x128xf32>
    %c4 = arith.constant 4 : index
    %c0_51 = arith.constant 0 : index
    %205 = vector.load %arg3[%c4, %c0_51] : memref<8x128xf32, #tpu.memory_space<vmem>>, vector<1x128xf32>
    %206 = vector.broadcast %205 : vector<1x128xf32> to vector<8x128xf32>
    %207 = arith.addf %204, %206 : vector<8x128xf32>
    %208 = vector.extract_strided_slice %207 {offsets = [0, 0], sizes = [8, 32], strides = [1, 1]} : vector<8x128xf32> to vector<8x32xf32>
    %209 = vector.extract_strided_slice %207 {offsets = [0, 32], sizes = [8, 8], strides = [1, 1]} : vector<8x128xf32> to vector<8x8xf32>
    %210 = vector.shape_cast %208 : vector<8x32xf32> to vector<8x1x32xf32>
    %211 = vector.broadcast %210 : vector<8x1x32xf32> to vector<8x8x32xf32>
    %212 = arith.mulf %36, %211 : vector<8x8x32xf32>
    %cst_52 = arith.constant dense<0.000000e+00> : vector<8x8xf32>
    %213 = vector.multi_reduction <add>, %212, %cst_52 [2] : vector<8x8x32xf32> to vector<8x8xf32>
    %214 = vector.shape_cast %209 : vector<8x8xf32> to vector<8x1x8xf32>
    %215 = vector.broadcast %214 : vector<8x1x8xf32> to vector<8x8x8xf32>
    %216 = arith.mulf %177, %215 : vector<8x8x8xf32>
    %cst_53 = arith.constant dense<0.000000e+00> : vector<8x8xf32>
    %217 = vector.multi_reduction <add>, %216, %cst_53 [2] : vector<8x8x8xf32> to vector<8x8xf32>
    %218 = arith.addf %213, %217 : vector<8x8xf32>
    %cst_54 = arith.constant 0.000000e+00 : f32
    %219 = vector.broadcast %cst_54 : f32 to vector<8x27xf32>
    %220 = tpu.concatenate %124, %122, %57, %81, %218, %195, %185, %169, %15, %219 in 1 : vector<8x32xf32>, vector<8x32xf32>, vector<8x8xf32>, vector<8x8xf32>, vector<8x8xf32>, vector<8x2xf32>, vector<8x2xf32>, vector<8x1xf32>, vector<8x8xf32>, vector<8x27xf32> -> vector<8x128xf32>
    %c0_55 = arith.constant 0 : index
    %c0_56 = arith.constant 0 : index
    %221 = vector.load %arg4[%c0_55, %c0_56] : memref<8x128xf32, #tpu.memory_space<vmem>>, vector<8x128xf32>
    tpu.vector_store %arg4[%c0_55, %c0_56], %220 {strides = array<i32>} : memref<8x128xf32, #tpu.memory_space<vmem>>, vector<8x128xf32>,
    return
  }
  func.func @transform_0(%arg0: i32) -> (i32, i32) {
    %c0_i32 = arith.constant 0 : i32
    %c0_i32_0 = arith.constant 0 : i32
    return %arg0, %c0_i32 : i32, i32
  }
  func.func @transform_1(%arg0: i32) -> (i32, i32) {
    %c0_i32 = arith.constant 0 : i32
    %c0_i32_0 = arith.constant 0 : i32
    %c0_i32_1 = arith.constant 0 : i32
    return %c0_i32, %c0_i32_0 : i32, i32
  }
  func.func @transform_2(%arg0: i32) -> (i32, i32) {
    %c0_i32 = arith.constant 0 : i32
    %c0_i32_0 = arith.constant 0 : i32
    %c0_i32_1 = arith.constant 0 : i32
    return %c0_i32, %c0_i32_0 : i32, i32
  }
  func.func @transform_3(%arg0: i32) -> (i32, i32) {
    %c0_i32 = arith.constant 0 : i32
    %c0_i32_0 = arith.constant 0 : i32
    return %arg0, %c0_i32 : i32, i32
  }
}

</mosaic_0001>

<bundles_post_ra>
// kernel: _regretful_call.1
= control target key start
LH: loop header
LB: loop body
LE: loop exit
PB: predicated region body
PF: predicated region fallthrough
CT: control target
= control target key end

     0   :  { %8 = vsyncpa [#allocation3], 0  ;;  %s2713_s0 = inlined_call_operand.vmem [shape: f32[448,128], index: 0, kind: input, shape index: {}]   ;;  %s2714_s1 = inlined_call_operand.vmem [shape: f32[416,128], index: 1, kind: input, shape index: {}]   ;;  %s2715_s2 = inlined_call_operand.vmem [shape: f32[8,128], index: 2, kind: input, shape index: {}]   ;;  %s2716_s3 = inlined_call_operand.hbm [shape: f32[16,128], index: 3, kind: output, shape index: {}]  }
   0x1   :  { %10 = vsyncpa [#allocation3 + $0x1], 0  ;;  %s2024_s12 = smov 0   ;;  %s2026_s13 = smov 0  }
   0x2   :  { %s2028_s14 = smov 0   ;;  %s2030_s15 = smov 0  }
   0x3 LB: > { %s2045_s16 = sadd.s32 4294967295, %s1983_s15   ;;  %s1703_s17 = sadd.s32 4294967294, %s1983_s15   ;;  %s1983_s15 = sphi %s2030_s15, %s2728_s15   ;;  %s1979_s14 = sphi %s2028_s14, %s2727_s14   ;;  %s1975_s13 = sphi %s2026_s13, %s2726_s13   ;;  %s1971_s12 = sphi %s2024_s12, %s2725_s12  }
   0x4   : > { %s2049_s18 = sadd.s32 1, %s1983_s15   ;;  %s91_s19 = sadd.s32 1, %s1979_s14 }
   0x5   : > { %s88_s20 = ssub.s32 %s1983_s15, %s2049_s18  ;;  %p101_p0 = scmp.ne.s32.totalorder %s1979_s14, %s1975_s13 }
   0x6   : > { %p89_p1 = scmp.eq.s32.totalorder %s88_s20, 0  ;;  %p102_p2 = scmp.eq.s32.totalorder %s2045_s16, 1 }
   0x7   : > { %p107_p3 = scmp.ne.s32.totalorder %s1975_s13, %s1971_s12  ;;  %p108_p4 = scmp.eq.s32.totalorder %s1703_s17, 1 }
   0x8   : > { %s2060_s21 = scalar_select %p89_p1, %s1979_s14, %s91_s19  }
   0x9   : > { %p2062_p5 = por %p102_p2, %p101_p0  ;;  %p2066_p6 = por %p108_p4, %p107_p3 }
   0xa   : > { %p1706_p7 = scmp.ge.s32.totalorder %s1983_s15, 1  ;;  %p141_p8 = scmp.lt.s32.totalorder %s1983_s15, 3 }
   0xc   : > { %p142_p9 = pnand %p1706_p7, %p141_p8 }
   0xd   : > { %s165_s28 = smul.u32 (!%p142_p9), 28, %s2045_s16  ;;  %s1987_s26 = smov (!%p142_p9), 96  }
   0xe   : > { %145 = sbr.rel (%p142_p9) target bundleno = 2795 (0xaeb), region = 32  ;;  %s1988_s27 = smov (!%p142_p9), 64  }
   0xf   : > { %p166_p10 = scmp.lt.s32.totalorder (!%p142_p9), %s165_s28, 55  ;;  %s1990_s6 = smov (!%p142_p9), 32  }
  0x10   : > { %s1991_s29 = smov (!%p142_p9), 120   ;;  %s1992_s17 = smov (!%p142_p9), 104  }
  0x11   : > { %s1995_s24 = smov (!%p142_p9), 126   ;;  %s1996_s25 = smov (!%p142_p9), 87  }
  0x12   : > { %s1941_s19 = scalar_lea.hbm (!%p142_p9), %s2716_s3, 16 }
  0x13   : > { %v223_v0 = vld [vmem:[%s2714_s1 + $0x78] sm:$0xff]  ;;  %v222_v1 = vld [vmem:[%s2714_s1 + $0x70] sm:$0xff]  ;;  %v1985_v2 = vmov 66   ;;  %v221_v3 = vld [vmem:[%s2714_s1 + $0x68] sm:$0xff]  ;;  %s2730_s28 = smov (!%p166_p10, %s165_s28), 55  ;;  %v172_v21 = vlaneseq  ;;  %v1986_v33 = vmov 0.0  }
  0x14   : > { %1729 = vmatpush.msra.mxu3 %v223_v0  ;;  %1833 = vset.pattern.permute.xlu0 %v1985_v2  ;;  %v220_v4 = vld [vmem:[%s2714_s1 + $0x60] sm:$0xff]  ;;  %v219_v5 = vld [vmem:[%s2714_s1 + $0x58] sm:$0xff]  ;;  %s1708_s8 = sshll.u32 %s2730_s28, 3  ;;  %v218_v6 = vld [vmem:[%s2714_s1 + $0x50] sm:$0xff]  ;;  %vm395_vm1 = vcmask 261120   ;;  %vm437_vm2 = vcmask 1041409  }
  0x15   : > { %224 = vmatpush.msra.mxu0 %v223_v0  ;;  %1727 = vmatpush.msra.mxu1 %v223_v0  ;;  %s2091_s11 = scalar_lea.vmem %s2713_s0, %s1708_s8  ;;  %v217_v8 = vld [vmem:[%s2714_s1 + $0x48] sm:$0xff]  ;;  %v216_v9 = vld [vmem:[%s2714_s1 + $0x40] sm:$0xff]  ;;  %v215_v10 = vld [vmem:[%s2714_s1 + $0x38] sm:$0xff]  ;;  %v2133_v22 = vshrl.u32 %v172_v21, 7  ;;  %v2145_v30 = vand.u32 127, %v172_v21  ;;  %vm439_vm3 = vcmask 1042434  }
  0x16   : > { %1732 = vmatpush.msra.mxu3 %v222_v1  ;;  %1728 = vmatpush.msra.mxu2 %v223_v0  ;;  %v2097_v7 = vld [vmem:[%s2091_s11 + $0xd8] sm:$0xff]  ;;  %v214_v11 = vld [vmem:[%s2714_s1 + $0x30] sm:$0xff]  ;;  %v213_v12 = vld [vmem:[%s2714_s1 + $0x28] sm:$0xff]  ;;  %vm441_vm4 = vcmask 1043459   ;;  %vm443_vm5 = vcmask 1044484   ;;  %vm445_vm6 = vcmask 1045509  }
  0x17   : > { %225 = vmatpush.msra.mxu0 %v222_v1  ;;  %1730 = vmatpush.msra.mxu1 %v222_v1  ;;  %v212_v13 = vld [vmem:[%s2714_s1 + $0x20] sm:$0xff]  ;;  %v211_v14 = vld [vmem:[%s2714_s1 + $0x18] sm:$0xff]  ;;  %v210_v15 = vld [vmem:[%s2714_s1 + $0x10] sm:$0xff]  ;;  %v2148_v31 = vcvt.s32.f32 %v2145_v30  ;;  %vm447_vm7 = vcmask 1046534   ;;  %vm449_vm8 = vcmask 1047559   ;;  %vm453_vm9 = vcmask 64512  }
  0x18   : > { %1735 = vmatpush.msra.mxu3 %v221_v3  ;;  %1731 = vmatpush.msra.mxu2 %v222_v1  ;;  %v209_v16 = vld [vmem:[%s2714_s1 + $0x8] sm:$0xff]  ;;  %v208_v17 = vld [vmem:[%s2714_s1] sm:$0xff]  ;;  %v207_v23 = vld [vmem:[%s2091_s11 + $0x50] sm:$0xff]  ;;  %s1997_s28 = smov 72  }
  0x19   : > { %226 = vmatpush.msra.mxu0 %v221_v3  ;;  %1733 = vmatpush.msra.mxu1 %v221_v3  ;;  %v206_v18 = vld [vmem:[%s2091_s11 + $0x48] sm:$0xff]  ;;  %v197_v19 = vld [vmem:[%s2091_s11] sm:$0xff]  ;;  %v199_v25 = vld [vmem:[%s2091_s11 + $0x10] sm:$0xff] }
  0x1a   : > { %1738 = vmatpush.msra.mxu3 %v220_v4  ;;  %1734 = vmatpush.msra.mxu2 %v221_v3  ;;  %v202_v20 = vld [vmem:[%s2091_s11 + $0x28] sm:$0xff]  ;;  %v200_v26 = vld [vmem:[%s2091_s11 + $0x18] sm:$0xff]  ;;  %v201_v27 = vld [vmem:[%s2091_s11 + $0x20] sm:$0xff] }
  0x1b   : > { %227 = vmatpush.msra.mxu0 %v220_v4  ;;  %1736 = vmatpush.msra.mxu1 %v220_v4  ;;  %v198_v24 = vld [vmem:[%s2091_s11 + $0x8] sm:$0xff]  ;;  %v204_v28 = vld [vmem:[%s2091_s11 + $0x38] sm:$0xff]  ;;  %v203_v29 = vld [vmem:[%s2091_s11 + $0x30] sm:$0xff] }
  0x1c   : > { %1741 = vmatpush.msra.mxu3 %v219_v5  ;;  %177 = vperm.xlu0 %1833, %v2097_v7  }
  0x1d   : > { %228 = vmatpush.msra.mxu0 %v219_v5  ;;  %1739 = vmatpush.msra.mxu1 %v219_v5 }
  0x1e   : > { %1744 = vmatpush.msra.mxu3 %v218_v6  ;;  %1737 = vmatpush.msra.mxu2 %v220_v4 }
  0x1f   : > { %229 = vmatpush.msra.mxu0 %v218_v6  ;;  %1742 = vmatpush.msra.mxu1 %v218_v6 }
  0x20   : > { %1747 = vmatpush.msra.mxu3 %v217_v8  ;;  %1740 = vmatpush.msra.mxu2 %v219_v5 }
  0x21   : > { %230 = vmatpush.msra.mxu0 %v217_v8  ;;  %1745 = vmatpush.msra.mxu1 %v217_v8 }
  0x22   : > { %1750 = vmatpush.msra.mxu3 %v216_v9  ;;  %1743 = vmatpush.msra.mxu2 %v218_v6 }
  0x23   : > { %231 = vmatpush.msra.mxu0 %v216_v9  ;;  %1748 = vmatpush.msra.mxu1 %v216_v9 }
  0x24   : > { %1753 = vmatpush.msra.mxu3 %v215_v10  ;;  %1746 = vmatpush.msra.mxu2 %v217_v8 }
  0x25   : > { %232 = vmatpush.msra.mxu0 %v215_v10  ;;  %1751 = vmatpush.msra.mxu1 %v215_v10 }
  0x26   : > { %1756 = vmatpush.msra.mxu3 %v214_v11  ;;  %1749 = vmatpush.msra.mxu2 %v216_v9 }
  0x27   : > { %233 = vmatpush.msra.mxu0 %v214_v11  ;;  %1754 = vmatpush.msra.mxu1 %v214_v11 }
  0x28   : > { %1759 = vmatpush.msra.mxu3 %v213_v12  ;;  %1752 = vmatpush.msra.mxu2 %v215_v10 }
  0x29   : > { %234 = vmatpush.msra.mxu0 %v213_v12  ;;  %1757 = vmatpush.msra.mxu1 %v213_v12 }
  0x2a   : > { %1762 = vmatpush.msra.mxu3 %v212_v13  ;;  %1755 = vmatpush.msra.mxu2 %v214_v11 }
  0x2b   : > { %235 = vmatpush.msra.mxu0 %v212_v13  ;;  %1760 = vmatpush.msra.mxu1 %v212_v13 }
  0x2c   : > { %1765 = vmatpush.msra.mxu3 %v211_v14  ;;  %1758 = vmatpush.msra.mxu2 %v213_v12 }
  0x2d   : > { %236 = vmatpush.msra.mxu0 %v211_v14  ;;  %1763 = vmatpush.msra.mxu1 %v211_v14 }
  0x2e   : > { %1768 = vmatpush.msra.mxu3 %v210_v15  ;;  %1761 = vmatpush.msra.mxu2 %v212_v13 }
  0x2f   : > { %237 = vmatpush.msra.mxu0 %v210_v15  ;;  %1766 = vmatpush.msra.mxu1 %v210_v15 }
  0x30   : > { %1771 = vmatpush.msra.mxu3 %v209_v16  ;;  %1764 = vmatpush.msra.mxu2 %v211_v14 }
  0x31   : > { %238 = vmatpush.msra.mxu0 %v209_v16  ;;  %1769 = vmatpush.msra.mxu1 %v209_v16 }
  0x32   : > { %1774 = vmatpush.msra.mxu3 %v208_v17  ;;  %1767 = vmatpush.msra.mxu2 %v210_v15 }
  0x33   : > { %267 = vmatmul.f32.vlgmr.msra.gmra.mxu3 %v206_v18  ;;  %239 = vmatpush.msra.mxu0 %v208_v17 }
  0x34   : > { %240 = vmatmul.f32.vlgmr.msra.gmra.mxu0 %v197_v19  ;;  %1772 = vmatpush.msra.mxu1 %v208_v17 }
  0x35   : > { %255 = vmatmul.f32.vlgmr.msra.gmra.mxu1 %v202_v20  ;;  %1770 = vmatpush.msra.mxu2 %v209_v16 }
  0x36   : > { %1834 = vset.pattern.permute.xlu0 %v2133_v22  ;;  %1840 = vset.pattern.permute.xlu1 %v2133_v22 }
  0x37   : > { %1773 = vmatpush.msra.mxu2 %v208_v17  ;;  %1846 = vset.pattern.permute.xlu2 %v2133_v22 }
  0x38   : > { %261 = vmatmul.f32.vlgmr.msra.gmra.mxu2 %v204_v28 }
  0x3b   : > { %270 = vmatmul.f32.gmra.mxu3 %v207_v23 }
  0x3c   : > { %243 = vmatmul.f32.gmra.mxu0 %v198_v24 }
  0x3d   : > { %258 = vmatmul.f32.gmra.mxu1 %v203_v29 }
  0x44   : > { %246 = vmatmul.f32.gmra.mxu0 %v199_v25 }
  0x4c   : > { %249 = vmatmul.f32.gmra.mxu0 %v200_v26 }
  0x54   : > { %252 = vmatmul.f32.gmra.mxu0 %v201_v27 }
  0x8e   : > { %v178_v32 = vpop.permute.xlu0 %177 }
  0x8f   : > { %vm180_vm0 = vcmp.lt.f32.partialorder %v2148_v31, %v178_v32 }
  0x90   : > { %v2152_v34 = vsel %vm180_vm0, 1.0, %v1986_v33 }
  0x91   : > { %v283_v35 = vperm.slane %v2152_v34, 0  ;;  %v290_v36 = vperm.slane %v2152_v34, 1  ;;  %v297_v37 = vperm.slane %v2152_v34, 2  ;;  %v304_v38 = vperm.slane %v2152_v34, 3 }
  0x92   : > { %v311_v39 = vperm.slane %v2152_v34, 4  ;;  %v318_v40 = vperm.slane %v2152_v34, 5  ;;  %v325_v44 = vperm.slane %v2152_v34, 6  ;;  %v332_v45 = vperm.slane %v2152_v34, 7 }
  0x93   : > { %v1835_v41 = vpack.i.bf16 %v290_v36, %v283_v35  ;;  %v1841_v42 = vpack.i.bf16 %v304_v38, %v297_v37  ;;  %vm420_vm10 = vcmp.eq.f32.partialorder %v2152_v34, 0.0 }
  0x94   : > { %v1847_v43 = vpack.i.bf16 %v318_v40, %v311_v39  ;;  %v1852_v46 = vpack.i.bf16 %v332_v45, %v325_v44 }
  0x95   : > { %1836 = vperm.xlu0 %1834, %v1835_v41   ;;  %1842 = vperm.xlu1 %1840, %v1841_v42  }
  0x96   : > { %1848 = vperm.xlu2 %1846, %v1847_v43  }
  0x9d   : > { %1853 = vperm.xlu1 %1840, %v1852_v46  }
  0xb1   : > { %v241_v16 = vpop.f32.mrf.mxu0 }
  0xb2   : > { %v256_v45 = vpop.f32.mrf.mxu1 }
  0xb6   : > { %v268_v47 = vpop.f32.mrf.mxu3 }
  0xb7   : > { %v355_v48 = vperm.slane %v268_v47, 0  ;;  %v348_v49 = vrot.slane %v268_v47, 1  ;;  %v349_v50 = vrot.slane %v268_v47, 2  ;;  %v352_v53 = vrot.slane %v268_v47, 5 }
  0xb8   : > { %v350_v54 = vrot.slane %v268_v47, 3  ;;  %v353_v55 = vrot.slane %v268_v47, 6  ;;  %v351_v62 = vrot.slane %v268_v47, 4  ;;  %v354_v3 = vrot.slane %v268_v47, 7 }
  0xb9   : > { %363 = vrot.lane.b32.xlu1 %v355_v48, %s1987_s26  ;;  %v356_v51 = vperm.slane %v348_v49, 0  ;;  %v357_v52 = vperm.slane %v349_v50, 0  ;;  %v360_v57 = vperm.slane %v352_v53, 0  ;;  %v244_v17 = vpop.f32.mrf.mxu0  ;;  %v274_v47 = vmax.f32 %v241_v16, 0.0 }
  0xba   : > { %v358_v58 = vperm.slane %v350_v54, 0  ;;  %v361_v59 = vperm.slane %v353_v55, 0  ;;  %v359_v0 = vperm.slane %v351_v62, 0  ;;  %v362_v6 = vperm.slane %v354_v3, 0 }
  0xbb   : > { %365 = vrot.lane.b32.xlu2 %v356_v51, %s1987_s26  ;;  %367 = vrot.lane.b32.xlu0 %v357_v52, %s1987_s26  ;;  %v275_v21 = vmax.f32 %v244_v17, 0.0 }
  0xbe   : > { %v271_v56 = vpop.f32.mrf.mxu3 }
  0xbf   : > { %v594_v60 = vrot.slane %v271_v56, 1  ;;  %v596_v63 = vrot.slane %v271_v56, 3  ;;  %v595_v2 = vrot.slane %v271_v56, 2  ;;  %v597_v4 = vrot.slane %v271_v56, 4 }
  0xc0   : > { %v599_v9 = vrot.slane %v271_v56, 6  ;;  %v600_v10 = vrot.slane %v271_v56, 7  ;;  %v601_v12 = vperm.slane %v271_v56, 0  ;;  %v598_v14 = vrot.slane %v271_v56, 5  ;;  %v259_v56 = vpop.f32.mrf.mxu1 }
  0xc1   : > { %373 = vrot.lane.b32.xlu1 %v360_v57, %s1987_s26  ;;  %v602_v61 = vperm.slane %v594_v60, 0  ;;  %v604_v1 = vperm.slane %v596_v63, 0  ;;  %v603_v5 = vperm.slane %v595_v2, 0  ;;  %v605_v8 = vperm.slane %v597_v4, 0  ;;  %v247_v18 = vpop.f32.mrf.mxu0 }
  0xc2   : > { %v607_v11 = vperm.slane %v599_v9, 0  ;;  %v608_v13 = vperm.slane %v600_v10, 0  ;;  %v606_v15 = vperm.slane %v598_v14, 0  ;;  %v276_v53 = vmax.f32 %v247_v18, 0.0 }
  0xc3   : > { %369 = vrot.lane.b32.xlu2 %v358_v58, %s1987_s26  ;;  %375 = vrot.lane.b32.xlu0 %v361_v59, %s1987_s26  ;;  %v1989_v10 = vmov 65  }
  0xc4   : > { %1857 = vset.pattern.permute.xlu1 %v1989_v10 }
  0xc9   : > { %611 = vrot.lane.b32.xlu1 %v602_v61, %s1988_s27  ;;  %v250_v25 = vpop.f32.mrf.mxu0  ;;  %v280_v61 = vmax.f32 %v259_v56, 0.0 }
  0xca   : > { %v277_v28 = vmax.f32 %v250_v25, 0.0 }
  0xcb   : > { %371 = vrot.lane.b32.xlu2 %v359_v0, %s1987_s26  ;;  %615 = vrot.lane.b32.xlu0 %v604_v1, %s1988_s27  ;;  %v279_v1 = vmax.f32 %v256_v45, 0.0 }
  0xd1   : > { %613 = vrot.lane.b32.xlu1 %v603_v5, %s1988_s27  ;;  %v253_v37 = vpop.f32.mrf.mxu0 }
  0xd2   : > { %v278_v40 = vmax.f32 %v253_v37, 0.0 }
  0xd3   : > { %377 = vrot.lane.b32.xlu2 %v362_v6, %s1987_s26  ;;  %617 = vrot.lane.b32.xlu0 %v605_v8, %s1988_s27 }
  0xd9   : > { %621 = vrot.lane.b32.xlu1 %v607_v11, %s1988_s27  ;;  %v2236_v11 = vld [vmem:[%s2091_s11 + $0x58] sm:$0xff] }
  0xdb   : > { %609 = vrot.lane.b32.xlu2 %v601_v12, %s1988_s27  ;;  %623 = vrot.lane.b32.xlu0 %v608_v13, %s1988_s27  ;;  %v2239_v13 = vld [vmem:[%s2091_s11 + $0x60] sm:$0xff] }
  0xe3   : > { %619 = vrot.lane.b32.xlu2 %v606_v15, %s1988_s27 }
  0xf0   : > { %v2178_v19 = vpop.permute.xlu2 %1848 }
  0xf1   : > { %v2718_v41 = vunpack.i.l.bf16 %v2178_v19  ;;  %v1851_v2 = vunpack.i.h.bf16 %v2178_v19 }
  0xf3   : > { %v2203_v44 = vmul.f32 %v2718_v41, %v278_v40  ;;  %v2232_v8 = vmul.f32 %v1851_v2, %v279_v1 }
 0x107   : > { %v2180_v20 = vpop.permute.xlu0 %1836  ;;  %v2187_v26 = vpop.permute.xlu1 %1842 }
 0x108   : > { %v1839_v23 = vunpack.i.h.bf16 %v2180_v20  ;;  %v1845_v29 = vunpack.i.h.bf16 %v2187_v26  ;;  %v1838_v48 = vunpack.i.l.bf16 %v2180_v20  ;;  %v2719_v54 = vunpack.i.l.bf16 %v2187_v26 }
 0x10a   : > { %v2185_v24 = vmul.f32 %v1839_v23, %v275_v21  ;;  %v2194_v36 = vmul.f32 %v1845_v29, %v277_v28  ;;  %v2210_v51 = vmul.f32 %v1838_v48, %v274_v47  ;;  %v2219_v60 = vmul.f32 %v2719_v54, %v276_v53  ;;  %v2262_v47 = vld [vmem:[%s2091_s11 + $0x80] sm:$0xff]  ;;  %v2266_v53 = vld [vmem:[%s2091_s11 + $0x88] sm:$0xff] }
 0x10f   : > { %v2199_v43 = vpop.permute.xlu1 %1853 }
 0x110   : > { %v2717_v62 = vunpack.i.l.bf16 %v2199_v43 }
 0x112   : > { %v2226_v3 = vmul.f32 %v2717_v62, %v280_v61  ;;  %v1856_v61 = vunpack.i.h.bf16 %v2199_v43 }
 0x115   : > { %v366_v27 = vpop.permute.xlu2 %365 }
 0x116   : > { %v388_v32 = vmul.f32 %v366_v27, %v2185_v24  ;;  %v2247_v27 = vld [vmem:[%s2091_s11 + $0x70] sm:$0xff] }
 0x118   : > { %v399_v35 = vsel %vm395_vm1, %v388_v32, 0.0  ;;  %v2251_v32 = vld [vmem:[%s2091_s11 + $0x68] sm:$0xff] }
 0x119   : > { %400 = vadd.xlane.f32.xlu2 %v399_v35 }
 0x11d   : > { %v370_v38 = vpop.permute.xlu2 %369 }
 0x11e   : > { %v390_v39 = vmul.f32 %v370_v38, %v2194_v36  ;;  %v2255_v38 = vld [vmem:[%s2091_s11 + $0x78] sm:$0xff] }
 0x120   : > { %v405_v42 = vsel %vm395_vm1, %v390_v39, 0.0 }
 0x121   : > { %406 = vadd.xlane.f32.xlu0 %v405_v42 }
 0x125   : > { %v372_v46 = vpop.permute.xlu2 %371 }
 0x126   : > { %v391_v49 = vmul.f32 %v372_v46, %v2203_v44 }
 0x128   : > { %v408_v50 = vsel %vm395_vm1, %v391_v49, 0.0 }
 0x129   : > { %409 = vadd.xlane.f32.xlu2 %v408_v50 }
 0x12b   : > { %v364_v52 = vpop.permute.xlu1 %363 }
 0x12c   : > { %v387_v55 = vmul.f32 %v364_v52, %v2210_v51  ;;  %v262_v52 = vpop.f32.mrf.mxu2 }
 0x12d   : > { %v368_v57 = vpop.permute.xlu0 %367  ;;  %v2215_v59 = vpop.permute.xlu2 %377 }
 0x12e   : > { %v396_v58 = vsel %vm395_vm1, %v387_v55, 0.0  ;;  %v389_v63 = vmul.f32 %v368_v57, %v2219_v60  ;;  %v2270_v57 = vld [vmem:[%s2091_s11 + $0x90] sm:$0xff] }
 0x12f   : > { %397 = vadd.xlane.f32.xlu1 %v396_v58  ;;  %v281_v58 = vmax.f32 %v262_v52, 0.0 }
 0x130   : > { %v402_v6 = vsel %vm395_vm1, %v389_v63, 0.0 }
 0x133   : > { %v374_v0 = vpop.permute.xlu1 %373 }
 0x134   : > { %v392_v14 = vmul.f32 %v374_v0, %v2232_v8 }
 0x135   : > { %v376_v4 = vpop.permute.xlu0 %375  ;;  %v610_v12 = vpop.permute.xlu2 %609 }
 0x136   : > { %v393_v5 = vmul.f32 %v376_v4, %v2226_v3  ;;  %v633_v16 = vmul.f32 %v610_v12, %v2236_v11  ;;  %v411_v25 = vsel %vm395_vm1, %v392_v14, 0.0 }
 0x137   : > { %403 = vadd.xlane.f32.xlu1 %v402_v6  ;;  %v2279_v6 = vmul.f32 %v1856_v61, %v281_v58 }
 0x138   : > { %v414_v9 = vsel %vm395_vm1, %v393_v5, 0.0  ;;  %v641_v28 = vsel %vm395_vm1, %v633_v16, 0.0 }
 0x139   : > { %415 = vadd.xlane.f32.xlu0 %v414_v9  ;;  %v394_v10 = vmul.f32 %v2215_v59, %v2279_v6 }
 0x13b   : > { %v612_v15 = vpop.permute.xlu1 %611  ;;  %v417_v12 = vsel %vm395_vm1, %v394_v10, 0.0 }
 0x13c   : > { %v634_v17 = vmul.f32 %v612_v15, %v2239_v13 }
 0x13d   : > { %v616_v18 = vpop.permute.xlu0 %615  ;;  %v620_v49 = vpop.permute.xlu2 %619 }
 0x13e   : > { %v644_v21 = vsel %vm395_vm1, %v634_v17, 0.0  ;;  %v636_v35 = vmul.f32 %v616_v18, %v2247_v27  ;;  %v638_v55 = vmul.f32 %v620_v49, %v2262_v47 }
 0x13f   : > { %645 = vadd.xlane.f32.xlu2 %v644_v21  ;;  %412 = vadd.xlane.f32.xlu1 %v411_v25 }
 0x140   : > { %v650_v46 = vsel %vm395_vm1, %v636_v35, 0.0  ;;  %v656_v4 = vsel %vm395_vm1, %v638_v55, 0.0 }
 0x141   : > { %642 = vadd.xlane.f32.xlu0 %v641_v28 }
 0x143   : > { %v614_v37 = vpop.permute.xlu1 %613 }
 0x144   : > { %v635_v39 = vmul.f32 %v614_v37, %v2251_v32 }
 0x145   : > { %v618_v40 = vpop.permute.xlu0 %617 }
 0x146   : > { %v637_v42 = vmul.f32 %v618_v40, %v2255_v38  ;;  %v647_v45 = vsel %vm395_vm1, %v635_v39, 0.0 }
 0x147   : > { %648 = vadd.xlane.f32.xlu2 %v647_v45  ;;  %651 = vadd.xlane.f32.xlu1 %v650_v46 }
 0x148   : > { %v653_v50 = vsel %vm395_vm1, %v637_v42, 0.0 }
 0x149   : > { %654 = vadd.xlane.f32.xlu0 %v653_v50 }
 0x14b   : > { %v622_v56 = vpop.permute.xlu1 %621 }
 0x14c   : > { %v639_v63 = vmul.f32 %v622_v56, %v2266_v53 }
 0x14d   : > { %v624_v0 = vpop.permute.xlu0 %623 }
 0x14e   : > { %v640_v1 = vmul.f32 %v624_v0, %v2270_v57  ;;  %v659_v5 = vsel %vm395_vm1, %v639_v63, 0.0 }
 0x14f   : > { %657 = vadd.xlane.f32.xlu2 %v656_v4  ;;  %660 = vadd.xlane.f32.xlu1 %v659_v5 }
 0x150   : > { %v662_v9 = vsel %vm395_vm1, %v640_v1, 0.0 }
 0x151   : > { %663 = vadd.xlane.f32.xlu0 %v662_v9 }
 0x157   : > { %418 = vadd.xlane.f32.xlu2 %v417_v12 }
 0x168   : > { %184 = vperm.xlu1 %1857, %v2097_v7  }
 0x170   : > { %1858 = vset.pattern.permute.xlu1 %v2133_v22 }
 0x18c   : > { %v401_v14 = vpop.xlane.xlu2 %400 }
 0x18d   : > { %v430_v39 = vperm.slane %v401_v14, %v2145_v30 }
 0x194   : > { %v407_v17 = vpop.xlane.xlu0 %406 }
 0x195   : > { %v432_v46 = vperm.slane %v407_v17, %v2145_v30 }
 0x19c   : > { %v410_v15 = vpop.xlane.xlu2 %409 }
 0x19d   : > { %v433_v52 = vperm.slane %v410_v15, %v2145_v30 }
 0x1a2   : > { %v398_v16 = vpop.xlane.xlu1 %397 }
 0x1a3   : > { %v429_v35 = vperm.slane %v398_v16, %v2145_v30 }
 0x1a5   : > { %v438_v7 = vsel %vm437_vm2, %v430_v39, %v429_v35 }
 0x1aa   : > { %v404_v21 = vpop.xlane.xlu1 %403 }
 0x1ab   : > { %v431_v59 = vperm.slane %v404_v21, %v2145_v30 }
 0x1ac   : > { %v416_v25 = vpop.xlane.xlu0 %415 }
 0x1ad   : > { %v440_v40 = vsel %vm439_vm3, %v431_v59, %v438_v7  ;;  %v435_v63 = vperm.slane %v416_v25, %v2145_v30 }
 0x1ae   : > { %v442_v49 = vsel %vm441_vm4, %v432_v46, %v440_v40 }
 0x1af   : > { %v444_v55 = vsel %vm443_vm5, %v433_v52, %v442_v49 }
 0x1b2   : > { %v646_v18 = vpop.xlane.xlu2 %645  ;;  %v413_v37 = vpop.xlane.xlu1 %412 }
 0x1b3   : > { %v434_v50 = vperm.slane %v413_v37, %v2145_v30  ;;  %v675_v12 = vperm.slane %v646_v18, %v2145_v30 }
 0x1b4   : > { %v643_v42 = vpop.xlane.xlu0 %642 }
 0x1b5   : > { %v446_v58 = vsel %vm445_vm6, %v434_v50, %v444_v55  ;;  %v674_v1 = vperm.slane %v643_v42, %v2145_v30 }
 0x1b6   : > { %v448_v10 = vsel %vm447_vm7, %v435_v63, %v446_v58 }
 0x1b7   : > { %v682_v16 = vsel %vm437_vm2, %v675_v12, %v674_v1 }
 0x1ba   : > { %v649_v28 = vpop.xlane.xlu2 %648  ;;  %v652_v56 = vpop.xlane.xlu1 %651 }
 0x1bb   : > { %v676_v5 = vperm.slane %v649_v28, %v2145_v30  ;;  %v677_v17 = vperm.slane %v652_v56, %v2145_v30 }
 0x1bc   : > { %v655_v9 = vpop.xlane.xlu0 %654 }
 0x1bd   : > { %v683_v25 = vsel %vm439_vm3, %v676_v5, %v682_v16  ;;  %v678_v28 = vperm.slane %v655_v9, %v2145_v30 }
 0x1be   : > { %v684_v59 = vsel %vm441_vm4, %v677_v17, %v683_v25 }
 0x1bf   : > { %v685_v37 = vsel %vm443_vm5, %v678_v28, %v684_v59 }
 0x1c2   : > { %v658_v45 = vpop.xlane.xlu2 %657  ;;  %v661_v35 = vpop.xlane.xlu1 %660 }
 0x1c3   : > { %v679_v18 = vperm.slane %v658_v45, %v2145_v30  ;;  %v680_v39 = vperm.slane %v661_v35, %v2145_v30 }
 0x1c4   : > { %v664_v7 = vpop.xlane.xlu0 %663 }
 0x1c5   : > { %v686_v40 = vsel %vm445_vm6, %v679_v18, %v685_v37  ;;  %v681_v42 = vperm.slane %v664_v7, %v2145_v30 }
 0x1c6   : > { %v687_v49 = vsel %vm447_vm7, %v680_v39, %v686_v40 }
 0x1c7   : > { %v688_v52 = vsel %vm449_vm8, %v681_v42, %v687_v49 }
 0x1ca   : > { %v419_v0 = vpop.xlane.xlu2 %418 }
 0x1cb   : > { %v436_v4 = vperm.slane %v419_v0, %v2145_v30 }
 0x1cd   : > { %v450_v14 = vsel %vm449_vm8, %v436_v4, %v448_v10 }
 0x1ce   : > { %v452_v15 = vsel %vm420_vm10, -1e+30, %v450_v14  ;;  %v205_v14 = vld [vmem:[%s2091_s11 + $0x40] sm:$0xff] }
 0x1cf   : > { %v454_v21 = vsel %vm453_vm9, %v452_v15, -inf  ;;  %264 = vmatmul.f32.gmra.mxu2 %v205_v14 }
 0x1d0   : > { %455 = vmax.xlane.f32.xlu2 %v454_v21 }
 0x1da   : > { %v185_v46 = vpop.permute.xlu1 %184 }
 0x1db   : > { %vm187_vm11 = vcmp.lt.f32.partialorder %v2148_v31, %v185_v46 }
 0x1dc   : > { %v1710_v50 = vsel %vm187_vm11, 1.0, %v1986_v33 }
 0x1dd   : > { %vm665_vm12 = vcmp.eq.f32.partialorder %v1710_v50, 0.0 }
 0x1de   : > { %v690_v45 = vsel %vm665_vm12, -1e+30, %v688_v52 }
 0x1df   : > { %v691_v55 = vsel %vm453_vm9, %v690_v45, -inf }
 0x1e0   : > { %692 = vmax.xlane.f32.xlu0 %v691_v55 }
 0x243   : > { %v456_v56 = vpop.xlane.xlu2 %455 }
 0x244   : > { %v457_v58 = vsub.f32 %v452_v15, %v456_v56 }
 0x246   : > { %v458_v63 = vmul.f32 1.442695, %v457_v58 }
 0x248   : > { %1894 = vpow2.f32 %v458_v63 }
 0x24e   : > { %v1895_v0 = vpop.eup %1894 }
 0x24f   : > { %v460_v1 = vsel %vm453_vm9, %v1895_v0, 0.0 }
 0x250   : > { %461 = vadd.xlane.f32.xlu2 %v460_v1 }
 0x253   : > { %v693_v4 = vpop.xlane.xlu0 %692 }
 0x254   : > { %v694_v5 = vsub.f32 %v690_v45, %v693_v4 }
 0x256   : > { %v695_v9 = vmul.f32 1.442695, %v694_v5 }
 0x258   : > { %1896 = vpow2.f32 %v695_v9 }
 0x25e   : > { %v1897_v10 = vpop.eup %1896 }
 0x25f   : > { %v697_v12 = vsel %vm453_vm9, %v1897_v10, 0.0 }
 0x260   : > { %698 = vadd.xlane.f32.xlu0 %v697_v12 }
 0x2c3   : > { %v462_v16 = vpop.xlane.xlu2 %461 }
 0x2c4   : > { %1898 = vrcp.f32 %v462_v16 }
 0x2ca   : > { %v1899_v17 = vpop.eup %1898 }
 0x2cb   : > { %v2325_v15 = vmul.f32 %v1899_v17, %v1895_v0  ;;  %v824_v17 = vld [vmem:[%s2714_s1 + $0x90] sm:$0xff] }
 0x2cd   : > { %v479_v21 = vperm.slane %v2325_v15, 2  ;;  %v465_v25 = vperm.slane %v2325_v15, 0  ;;  %v472_v28 = vperm.slane %v2325_v15, 1  ;;  %v500_v59 = vperm.slane %v2325_v15, 5 }
 0x2ce   : > { %v486_v18 = vperm.slane %v2325_v15, 3  ;;  %v493_v37 = vperm.slane %v2325_v15, 4  ;;  %v507_v40 = vperm.slane %v2325_v15, 6  ;;  %v514_v56 = vperm.slane %v2325_v15, 7 }
 0x2cf   : > { %484 = vperm.xlu1 %1858, %v479_v21   ;;  %470 = vperm.xlu2 %1846, %v465_v25  }
 0x2d0   : > { %477 = vperm.xlu0 %1834, %v472_v28  }
 0x2d3   : > { %v699_v35 = vpop.xlane.xlu0 %698 }
 0x2d4   : > { %1900 = vrcp.f32 %v699_v35  ;;  %v823_v35 = vld [vmem:[%s2714_s1 + $0x88] sm:$0xff] }
 0x2d7   : > { %505 = vperm.xlu1 %1858, %v500_v59   ;;  %491 = vperm.xlu2 %1846, %v486_v18  }
 0x2d8   : > { %498 = vperm.xlu0 %1834, %v493_v37   ;;  %v265_v37 = vpop.f32.mrf.mxu2 }
 0x2da   : > { %v1901_v39 = vpop.eup %1900 }
 0x2db   : > { %v2333_v7 = vmul.f32 %v1901_v39, %v1897_v10  ;;  %v825_v10 = vld [vmem:[%s2714_s1 + $0x98] sm:$0xff] }
 0x2dc   : > { %882 = vmatpush.msrb.mxu2 %v825_v10 }
 0x2dd   : > { %v716_v42 = vperm.slane %v2333_v7, 2  ;;  %v702_v46 = vperm.slane %v2333_v7, 0  ;;  %v730_v49 = vperm.slane %v2333_v7, 4  ;;  %v709_v50 = vperm.slane %v2333_v7, 1 }
 0x2de   : > { %v737_v52 = vperm.slane %v2333_v7, 5  ;;  %v751_v45 = vperm.slane %v2333_v7, 7  ;;  %v723_v55 = vperm.slane %v2333_v7, 3  ;;  %v744_v58 = vperm.slane %v2333_v7, 6  ;;  %883 = vmatpush.msrb.mxu2 %v824_v17 }
 0x2df   : > { %512 = vperm.xlu2 %1846, %v507_v40   ;;  %707 = vperm.xlu1 %1858, %v702_v46   ;;  %v829_v46 = vld [vmem:[%s2714_s1 + $0xb8] sm:$0xff] }
 0x2e0   : > { %721 = vperm.xlu0 %1834, %v716_v42   ;;  %884 = vmatpush.msrb.mxu2 %v823_v35  ;;  %v282_v42 = vmax.f32 %v265_v37, 0.0 }
 0x2e1   : > { %859 = vmatpush.msrb.mxu1 %v829_v46  ;;  %v934_v46 = vld [vmem:[%s2714_s1 + $0xf0] sm:$0xff] }
 0x2e7   : > { %735 = vperm.xlu2 %1846, %v730_v49   ;;  %714 = vperm.xlu1 %1858, %v709_v50   ;;  %v822_v49 = vld [vmem:[%s2714_s1 + $0x80] sm:$0xff] }
 0x2e8   : > { %742 = vperm.xlu0 %1834, %v737_v52   ;;  %885 = vmatpush.msrb.mxu2 %v822_v49 }
 0x2e9   : > { %1713 = vmatmul.msk.f32.vlgmr.msrb.gmra.mxu2 %vm395_vm1, %v282_v42 }
 0x2ef   : > { %756 = vperm.xlu2 %1846, %v751_v45   ;;  %728 = vperm.xlu1 %1858, %v723_v55   ;;  %v828_v45 = vld [vmem:[%s2714_s1 + $0xb0] sm:$0xff] }
 0x2f0   : > { %519 = vperm.xlu0 %1834, %v514_v56   ;;  %860 = vmatpush.msrb.mxu1 %v828_v45 }
 0x2f7   : > { %749 = vperm.xlu1 %1858, %v744_v58  }
 0x329   : > { %v471_v63 = vpop.permute.xlu2 %470 }
 0x32a   : > { %v521_v9 = vmul.f32 %v471_v63, %v2210_v51 }
 0x32c   : > { %v529_v21 = vsel %vm395_vm1, %v521_v9, 0.0 }
 0x32d   : > { %v530_v39 = vrot.slane %v529_v21, 4 }
 0x32f   : > { %v531_v63 = vadd.f32 %v530_v39, %v529_v21  ;;  %v893_v39 = vld [vmem:[%s2714_s1 + $0xd8] sm:$0xff] }
 0x330   : > { %923 = vmatpush.msrb.mxu3 %v893_v39 }
 0x331   : > { %v492_v0 = vpop.permute.xlu2 %491  ;;  %v532_v35 = vrot.slane %v531_v63, 2 }
 0x332   : > { %v524_v25 = vmul.f32 %v492_v0, %v2194_v36  ;;  %v827_v0 = vld [vmem:[%s2714_s1 + $0xa8] sm:$0xff] }
 0x333   : > { %861 = vmatpush.msrb.mxu1 %v827_v0  ;;  %v533_v45 = vadd.f32 %v532_v35, %v531_v63  ;;  %v933_v0 = vld [vmem:[%s2714_s1 + $0xe8] sm:$0xff]  ;;  %v932_v63 = vld [vmem:[%s2714_s1 + $0xe0] sm:$0xff] }
 0x334   : > { %v550_v52 = vsel %vm395_vm1, %v524_v25, 0.0 }
 0x339   : > { %v513_v12 = vpop.permute.xlu2 %512 }
 0x33a   : > { %v527_v9 = vmul.f32 %v513_v12, %v2226_v3 }
 0x341   : > { %v485_v1 = vpop.permute.xlu1 %484 }
 0x342   : > { %v478_v4 = vpop.permute.xlu0 %477  ;;  %v523_v16 = vmul.f32 %v485_v1, %v2219_v60  ;;  %v551_v1 = vrot.slane %v550_v52, 4 }
 0x343   : > { %v522_v5 = vmul.f32 %v478_v4, %v2185_v24  ;;  %v736_v4 = vpop.permute.xlu2 %735 }
 0x344   : > { %v543_v40 = vsel %vm395_vm1, %v523_v16, 0.0  ;;  %v552_v12 = vadd.f32 %v551_v1, %v550_v52  ;;  %v762_v49 = vmul.f32 %v736_v4, %v2255_v38 }
 0x345   : > { %v536_v14 = vsel %vm395_vm1, %v522_v5, 0.0  ;;  %v544_v56 = vrot.slane %v543_v40, 4 }
 0x346   : > { %v537_v59 = vrot.slane %v536_v14, 4  ;;  %v553_v1 = vrot.slane %v552_v12, 2 }
 0x347   : > { %v545_v17 = vadd.f32 %v544_v56, %v543_v40  ;;  %v571_v40 = vsel %vm395_vm1, %v527_v9, 0.0  ;;  %v890_v9 = vld [vmem:[%s2714_s1 + $0xc0] sm:$0xff] }
 0x348   : > { %v538_v55 = vadd.f32 %v537_v59, %v536_v14  ;;  %v826_v14 = vld [vmem:[%s2714_s1 + $0xa0] sm:$0xff]  ;;  %v572_v38 = vrot.slane %v571_v40, 4 }
 0x349   : > { %v506_v28 = vpop.permute.xlu1 %505  ;;  %862 = vmatpush.msrb.mxu1 %v826_v14  ;;  %v546_v52 = vrot.slane %v545_v17, 2  ;;  %v794_v14 = vsel %vm395_vm1, %v762_v49, 0.0 }
 0x34a   : > { %v499_v18 = vpop.permute.xlu0 %498  ;;  %v526_v58 = vmul.f32 %v506_v28, %v2232_v8  ;;  %v539_v16 = vrot.slane %v538_v55, 2 }
 0x34b   : > { %v525_v50 = vmul.f32 %v499_v18, %v2203_v44  ;;  %v935_v18 = vld [vmem:[%s2714_s1 + $0xf8] sm:$0xff] }
 0x34c   : > { %v564_v21 = vsel %vm395_vm1, %v526_v58, 0.0  ;;  %950 = vmatpush.msra.mxu1 %v935_v18  ;;  %v891_v58 = vld [vmem:[%s2714_s1 + $0xc8] sm:$0xff]  ;;  %v534_v18 = vrot.slane %v533_v45, 1 }
 0x34d   : > { %v557_v5 = vsel %vm395_vm1, %v525_v50, 0.0  ;;  %v565_v42 = vrot.slane %v564_v21, 4  ;;  %v540_v50 = vadd.f32 %v539_v16, %v538_v55 }
 0x34e   : > { %v558_v59 = vrot.slane %v557_v5, 4  ;;  %951 = vmatpush.msra.mxu1 %v934_v46 }
 0x34f   : > { %v541_v16 = vrot.slane %v540_v50, 1 }
 0x350   : > { %v559_v56 = vadd.f32 %v558_v59, %v557_v5  ;;  %952 = vmatpush.msra.mxu1 %v933_v0  ;;  %v566_v5 = vadd.f32 %v565_v42, %v564_v21  ;;  %v1002_v21 = vld [vmem:[%s2714_s1 + $0x118] sm:$0xff]  ;;  %v554_v42 = vadd.f32 %v553_v1, %v552_v12 }
 0x351   : > { %v708_v10 = vpop.permute.xlu1 %707 }
 0x352   : > { %v722_v25 = vpop.permute.xlu0 %721  ;;  %v758_v28 = vmul.f32 %v708_v10, %v2236_v11  ;;  %953 = vmatpush.msra.mxu1 %v932_v63  ;;  %v567_v0 = vrot.slane %v566_v5, 2  ;;  %v542_v63 = vadd.f32 %v541_v16, %v540_v50 }
 0x353   : > { %v760_v37 = vmul.f32 %v722_v25, %v2251_v32  ;;  %v892_v32 = vld [vmem:[%s2714_s1 + $0xd0] sm:$0xff]  ;;  %v547_v25 = vadd.f32 %v546_v52, %v545_v17  ;;  %v795_v52 = vrot.slane %v794_v14, 4 }
 0x354   : > { %v766_v11 = vsel %vm395_vm1, %v758_v28, 0.0  ;;  %924 = vmatpush.msrb.mxu3 %v892_v32  ;;  %v757_v28 = vpop.permute.xlu2 %756  ;;  %v573_v32 = vadd.f32 %v572_v38, %v571_v40  ;;  %v568_v50 = vadd.f32 %v567_v0, %v566_v5 }
 0x355   : > { %v780_v55 = vsel %vm395_vm1, %v760_v37, 0.0  ;;  %v767_v4 = vrot.slane %v766_v11, 4  ;;  %v560_v37 = vrot.slane %v559_v56, 2  ;;  %v548_v12 = vrot.slane %v547_v25, 1 }
 0x356   : > { %925 = vmatpush.msrb.mxu3 %v891_v58  ;;  %v781_v39 = vrot.slane %v780_v55, 4  ;;  %v765_v58 = vmul.f32 %v757_v28, %v2270_v57  ;;  %v555_v57 = vrot.slane %v554_v42, 1  ;;  %v574_v28 = vrot.slane %v573_v32, 2 }
 0x357   : > { %v768_v49 = vadd.f32 %v767_v4, %v766_v11  ;;  %v561_v40 = vadd.f32 %v560_v37, %v559_v56  ;;  %v999_v4 = vld [vmem:[%s2714_s1 + $0x100] sm:$0xff]  ;;  %v569_v0 = vrot.slane %v568_v50, 1 }
 0x358   : > { %926 = vmatpush.msrb.mxu3 %v890_v9  ;;  %v1000_v9 = vld [vmem:[%s2714_s1 + $0x108] sm:$0xff]  ;;  %v782_v11 = vadd.f32 %v781_v39, %v780_v55  ;;  %v549_v55 = vadd.f32 %v548_v12, %v547_v25 }
 0x359   : > { %v715_v10 = vpop.permute.xlu1 %714 }
 0x35a   : > { %v743_v35 = vpop.permute.xlu0 %742  ;;  %v759_v59 = vmul.f32 %v715_v10, %v2239_v13  ;;  %1044 = vmatpush.msra.mxu3 %v1002_v21  ;;  %v1001_v13 = vld [vmem:[%s2714_s1 + $0x110] sm:$0xff]  ;;  %v535_v10 = vadd.f32 %v534_v18, %v533_v45  ;;  %v815_v21 = vsel %vm395_vm1, %v765_v58, 0.0  ;;  %v783_v45 = vrot.slane %v782_v11, 2 }
 0x35b   : > { %v763_v46 = vmul.f32 %v743_v35, %v2262_v47  ;;  %v769_v35 = vrot.slane %v768_v49, 2  ;;  %v575_v58 = vadd.f32 %v574_v28, %v573_v32 }
 0x35c   : > { %v773_v17 = vsel %vm395_vm1, %v759_v59, 0.0  ;;  %1045 = vmatpush.msra.mxu3 %v1001_v13  ;;  %v796_v59 = vadd.f32 %v795_v52, %v794_v14  ;;  %v838_v56 = vsel %vm437_vm2, %v542_v63, %v535_v10  ;;  %v816_v14 = vrot.slane %v815_v21, 4 }
 0x35d   : > { %v774_v47 = vrot.slane %v773_v17, 4  ;;  %v801_v1 = vsel %vm395_vm1, %v763_v46, 0.0  ;;  %v770_v52 = vadd.f32 %v769_v35, %v768_v49  ;;  %v839_v12 = vsel %vm439_vm3, %v549_v55, %v838_v56 }
 0x35e   : > { %1046 = vmatpush.msra.mxu3 %v1000_v9  ;;  %v802_v37 = vrot.slane %v801_v1, 4  ;;  %v556_v9 = vadd.f32 %v555_v57, %v554_v42  ;;  %v576_v49 = vrot.slane %v575_v58, 1  ;;  %v570_v35 = vadd.f32 %v569_v0, %v568_v50 }
 0x35f   : > { %v775_v38 = vadd.f32 %v774_v47, %v773_v17  ;;  %v562_v17 = vrot.slane %v561_v40, 1  ;;  %v771_v42 = vrot.slane %v770_v52, 1 }
 0x360   : > { %1047 = vmatpush.msra.mxu3 %v999_v4  ;;  %v803_v10 = vadd.f32 %v802_v37, %v801_v1  ;;  %v840_v28 = vsel %vm441_vm4, %v556_v9, %v839_v12  ;;  %v577_v50 = vadd.f32 %v576_v49, %v575_v58  ;;  %v1182_v58 = vld [vmem:[%s2714_s1 + $0x178] sm:$0xff] }
 0x361   : > { %v776_v16 = vrot.slane %v775_v38, 2  ;;  %v729_v13 = vpop.permute.xlu1 %728  ;;  %v563_v62 = vadd.f32 %v562_v17, %v561_v40 }
 0x362   : > { %v520_v39 = vpop.permute.xlu0 %519  ;;  %v761_v46 = vmul.f32 %v729_v13, %v2247_v27  ;;  %v797_v13 = vrot.slane %v796_v59, 2 }
 0x363   : > { %v777_v18 = vadd.f32 %v776_v16, %v775_v38  ;;  %v528_v47 = vmul.f32 %v520_v39, %v2279_v6  ;;  %v784_v38 = vadd.f32 %v783_v45, %v782_v11  ;;  %v817_v39 = vadd.f32 %v816_v14, %v815_v21 }
 0x364   : > { %v787_v5 = vsel %vm395_vm1, %v761_v46, 0.0  ;;  %v798_v56 = vadd.f32 %v797_v13, %v796_v59  ;;  %v841_v40 = vsel %vm443_vm5, %v563_v62, %v840_v28  ;;  %v772_v21 = vadd.f32 %v771_v42, %v770_v52  ;;  %v1179_v28 = vld [vmem:[%s2714_s1 + $0x160] sm:$0xff] }
 0x365   : > { %v578_v63 = vsel %vm395_vm1, %v528_v47, 0.0  ;;  %v788_v25 = vrot.slane %v787_v5, 4  ;;  %v778_v27 = vrot.slane %v777_v18, 1  ;;  %v804_v47 = vrot.slane %v803_v10, 2 }
 0x366   : > { %v579_v4 = vrot.slane %v578_v63, 4  ;;  %v785_v55 = vrot.slane %v784_v38, 1  ;;  %v818_v11 = vrot.slane %v817_v39, 2 }
 0x367   : > { %v789_v16 = vadd.f32 %v788_v25, %v787_v5  ;;  %v779_v41 = vadd.f32 %v778_v27, %v777_v18  ;;  %v805_v0 = vadd.f32 %v804_v47, %v803_v10 }
 0x368   : > { %v580_v57 = vadd.f32 %v579_v4, %v578_v63  ;;  %v842_v63 = vsel %vm445_vm6, %v570_v35, %v841_v40  ;;  %v786_v59 = vadd.f32 %v785_v55, %v784_v38  ;;  %v819_v27 = vadd.f32 %v818_v11, %v817_v39  ;;  %v1181_v39 = vld [vmem:[%s2714_s1 + $0x170] sm:$0xff]  ;;  %v1180_v35 = vld [vmem:[%s2714_s1 + $0x168] sm:$0xff] }
 0x369   : > { %v790_v46 = vrot.slane %v789_v16, 2  ;;  %v750_v32 = vpop.permute.xlu1 %749  ;;  %v902_v9 = vsel %vm437_vm2, %v779_v41, %v772_v21  ;;  %v843_v4 = vsel %vm447_vm7, %v577_v50, %v842_v63  ;;  %v806_v10 = vrot.slane %v805_v0, 1  ;;  %v1889_v50 = vld [vmem:[%s2715_s2] ss:$0 sm:$0xff] }
 0x36a   : > { %v581_v54 = vrot.slane %v580_v57, 2  ;;  %v764_v1 = vmul.f32 %v750_v32, %v2266_v53  ;;  %v799_v53 = vrot.slane %v798_v56, 1  ;;  %v903_v52 = vsel %vm439_vm3, %v786_v59, %v902_v9 }
 0x36b   : > { %v791_v37 = vadd.f32 %v790_v46, %v789_v16  ;;  %v820_v42 = vrot.slane %v819_v27, 1  ;;  %v807_v46 = vadd.f32 %v806_v10, %v805_v0 }
 0x36c   : > { %v582_v17 = vadd.f32 %v581_v54, %v580_v57  ;;  %v808_v45 = vsel %vm395_vm1, %v764_v1, 0.0  ;;  %v800_v16 = vadd.f32 %v799_v53, %v798_v56  ;;  %v887_v11 = vpop.f32.mrf.mxu2 }
 0x36d   : > { %v792_v14 = vrot.slane %v791_v37, 1  ;;  %v809_v5 = vrot.slane %v808_v45, 4  ;;  %v821_v47 = vadd.f32 %v820_v42, %v819_v27 }
 0x36e   : > { %v583_v18 = vrot.slane %v582_v17, 1 }
 0x36f   : > { %v793_v25 = vadd.f32 %v792_v14, %v791_v37  ;;  %v810_v12 = vadd.f32 %v809_v5, %v808_v45  ;;  %v2466_v37 = vld [vmem:[%s2091_s11 + $0xd8] sm:$0xff] }
 0x370   : > { %v584_v62 = vadd.f32 %v583_v18, %v582_v17 }
 0x371   : > { %v811_v54 = vrot.slane %v810_v12, 2  ;;  %v904_v41 = vsel %vm441_vm4, %v793_v25, %v903_v52 }
 0x372   : > { %v844_v13 = vsel %vm449_vm8, %v584_v62, %v843_v4  ;;  %v905_v49 = vsel %vm443_vm5, %v800_v16, %v904_v41 }
 0x373   : > { %v812_v38 = vadd.f32 %v811_v54, %v810_v12  ;;  %1712 = vmatmul.msk.f32.vlgmr.msrb.gmra.mxu1 %vm395_vm1, %v844_v13  ;;  %v906_v1 = vsel %vm445_vm6, %v807_v46, %v905_v49  ;;  %v1005_v46 = vld [vmem:[%s2714_s1 + $0x130] sm:$0xff] }
 0x374   : > { %1195 = vmatpush.msrb.mxu1 %v1182_v58 }
 0x375   : > { %v813_v57 = vrot.slane %v812_v38, 1 }
 0x376   : > { %1196 = vmatpush.msrb.mxu1 %v1181_v39 }
 0x377   : > { %v814_v32 = vadd.f32 %v813_v57, %v812_v38 }
 0x378   : > { %1197 = vmatpush.msrb.mxu1 %v1180_v35  ;;  %v1006_v35 = vld [vmem:[%s2714_s1 + $0x138] sm:$0xff] }
 0x379   : > { %v907_v56 = vsel %vm447_vm7, %v814_v32, %v906_v1  ;;  %1024 = vmatpush.msra.mxu2 %v1006_v35  ;;  %v1004_v32 = vld [vmem:[%s2714_s1 + $0x128] sm:$0xff] }
 0x37a   : > { %v908_v55 = vsel %vm449_vm8, %v821_v47, %v907_v56  ;;  %1198 = vmatpush.msrb.mxu1 %v1179_v28  ;;  %v1003_v28 = vld [vmem:[%s2714_s1 + $0x120] sm:$0xff] }
 0x37b   : > { %1715 = vmatmul.msk.f32.vlgmr.msra.gmra.mxu1 %vm395_vm1, %v2466_v37  ;;  %1714 = vmatmul.msk.f32.vlgmr.msrb.gmra.mxu3 %vm395_vm1, %v908_v55  ;;  %v2498_v47 = vld [vmem:[%s2715_s2 + $0x3] ss:$0 sm:$0xff] }
 0x37c   : > { %1025 = vmatpush.msra.mxu2 %v1005_v46  ;;  %v1251_v1 = vmul.f32 %v2498_v47, %v2333_v7 }
 0x37e   : > { %1026 = vmatpush.msra.mxu2 %v1004_v32  ;;  %v1252_v56 = vsel %vm453_vm9, %v1251_v1, 0.0 }
 0x380   : > { %1027 = vmatpush.msra.mxu2 %v1003_v28 }
 0x383   : > { %1719 = vmatmul.msk.f32.vlgmr.msrb.gmra.mxu1 %vm395_vm1, %v844_v13  ;;  %1718 = vmatmul.msk.f32.vlgmr.msra.gmra.mxu3 %vm395_vm1, %v908_v55  ;;  %v1178_v55 = vld [vmem:[%s2714_s1 + $0x158] sm:$0xff] }
 0x384   : > { %1215 = vmatpush.msrb.mxu2 %v1178_v55 }
 0x3f0   : > { %v864_v40 = vpop.f32.mrf.mxu1 }
 0x3f1   : > { %v888_v21 = vadd.f32 %v887_v11, %v864_v40  ;;  %v1177_v40 = vld [vmem:[%s2714_s1 + $0x150] sm:$0xff]  ;;  %v1176_v11 = vld [vmem:[%s2714_s1 + $0x148] sm:$0xff] }
 0x3f2   : > { %1216 = vmatpush.msrb.mxu2 %v1177_v40 }
 0x3f4   : > { %1217 = vmatpush.msrb.mxu2 %v1176_v11 }
 0x3f8   : > { %v955_v14 = vpop.f32.mrf.mxu1 }
 0x3fe   : > { %v928_v17 = vpop.f32.mrf.mxu3 }
 0x3ff   : > { %v931_v45 = vadd.f32 %v928_v17, %v888_v21  ;;  %v1175_v21 = vld [vmem:[%s2714_s1 + $0x140] sm:$0xff] }
 0x400   : > { %1218 = vmatpush.msrb.mxu2 %v1175_v21 }
 0x401   : > { %v958_v5 = vadd.f32 %v955_v14, %v931_v45  ;;  %v1200_v14 = vpop.f32.mrf.mxu1 }
 0x403   : > { %v961_v0 = vadd.f32 %v1889_v50, %v958_v5  ;;  %v1891_v50 = vld [vmem:[%s2715_s2 + $0x2] ss:$0 sm:$0xff] }
 0x405   : > { %1902 = vtanh.f32 %v961_v0  ;;  %v1716_v18 = vmul.f32 -1.442695, %v961_v0 }
 0x407   : > { %1904 = vpow2.f32 %v1716_v18 }
 0x40b   : > { %v1903_v9 = vpop.eup %1902 }
 0x40c   : > { %984 = vrot.lane.b32.xlu1 %v1903_v9, %s1988_s27 }
 0x40d   : > { %v1905_v63 = vpop.eup %1904 }
 0x40e   : > { %v965_v53 = vadd.f32 1.0, %v1905_v63  ;;  %v1993_v63 = vmov 67  }
 0x40f   : > { %1860 = vset.pattern.permute.xlu0 %v1993_v63 }
 0x410   : > { %1906 = vrcp.f32 %v965_v53  ;;  %v977_v52 = vand.u32 2147483648, %v965_v53  ;;  %vm971_vm14 = vweird.f32 %v965_v53  ;;  %v975_v54 = vand.u32 2147483647, %v965_v53 }
 0x412   : > { %v978_v58 = vor.u32 1.1754944e-38, %v977_v52  ;;  %vm976_vm0 = vcmp.eq.f32.partialorder %v975_v54, 8.507059e+37 }
 0x416   : > { %v1907_v59 = vpop.eup %1906 }
 0x417   : > { %v967_v25 = vmul.f32 %v1907_v59, %v965_v53  ;;  %vm972_vm13 = vweird.f32 %v1907_v59 }
 0x418   : > { %vm973_vm15 = vmor %vm971_vm14, %vm972_vm13 }
 0x419   : > { %v968_v12 = vsub.f32 1.0, %v967_v25 }
 0x41b   : > { %v969_v27 = vmul.f32 %v1907_v59, %v968_v12 }
 0x41d   : > { %v970_v62 = vadd.f32 %v1907_v59, %v969_v27 }
 0x41f   : > { %v974_v4 = vsel %vm973_vm15, %v1907_v59, %v970_v62  ;;  %vm1368_vm15 = vcmask 351560  }
 0x420   : > { %v979_v41 = vsel %vm976_vm0, %v978_v58, %v974_v4  ;;  %vm1379_vm0 = vcmask 15360  }
 0x421   : > { %v982_v16 = vmul.f32 %v2466_v37, %v979_v41 }
 0x47e   : > { %v985_v10 = vpop.permute.xlu1 %984 }
 0x47f   : > { %v987_v13 = vmul.f32 %v985_v10, %v979_v41 }
 0x481   : > { %989 = vrot.lane.b32.xlu0 %v987_v13, %s1990_s6 }
 0x4f3   : > { %v990_v38 = vpop.permute.xlu0 %989 }
 0x4f4   : > { %v2478_v39 = vadd.f32 %v990_v38, %v982_v16 }
 0x4f6   : > { %1908 = vtanh.f32 %v2478_v39 }
 0x4fc   : > { %v1909_v42 = vpop.eup %1908 }
 0x4fd   : > { %1245 = vrot.lane.b32.xlu0 %v1909_v42, %s1987_s26  ;;  %995 = vrot.lane.b32.xlu2 %v1909_v42, %s1988_s27 }
 0x505   : > { %1256 = vrot.lane.b32.xlu2 %v2498_v47, %s1991_s29  ;;  %s2000_s29 = smov 47  }
 0x50d   : > { %1354 = vrot.lane.b32.xlu2 %v2466_v37, %s1992_s17 }
 0x557   : > { %v996_v57 = vpop.permute.xlu2 %995 }
 0x558   : > { %v998_v49 = vmul.f32 %v996_v57, %v979_v41 }
 0x55a   : > { %1008 = vrot.lane.b32.xlu1 %v998_v49, %s1990_s6  ;;  %v1994_v49 = vmov 40  }
 0x55b   : > { %1859 = vset.pattern.permute.xlu2 %v1994_v49  ;;  %1885 = vset.pattern.permute.xlu1 %v1994_v49 }
 0x55f   : > { %v1257_v16 = vpop.permute.xlu2 %1256 }
 0x567   : > { %v1355_v1 = vpop.permute.xlu2 %1354 }
 0x56f   : > { %v1246_v41 = vpop.permute.xlu0 %1245 }
 0x584   : > { %1253 = vadd.xlane.f32.xlu1 %v1252_v56 }
 0x5cc   : > { %v2516_v17 = vpop.permute.xlu1 %1008 }
 0x5cd   : > { %1717 = vmatmul.msk.f32.vlgmr.msra.gmra.mxu2 %vm395_vm1, %v2516_v17 }
 0x5d5   : > { %1720 = vmatmul.msk.f32.vlgmr.msrb.gmra.mxu2 %vm395_vm1, %v2466_v37 }
 0x5f7   : > { %v1254_v35 = vpop.xlane.xlu1 %1253 }
 0x650   : > { %v2523_v45 = vpop.f32.mrf.mxu2 }
 0x658   : > { %v1220_v5 = vpop.f32.mrf.mxu2 }
 0x659   : > { %v1221_v0 = vadd.f32 %v1220_v5, %v1200_v14 }
 0x65b   : > { %v1225_v9 = vadd.f32 %v1891_v50, %v1221_v0 }
 0x65d   : > { %v1721_v18 = vmul.f32 -1.442695, %v1225_v9 }
 0x65f   : > { %1910 = vpow2.f32 %v1721_v18 }
 0x665   : > { %v1911_v53 = vpop.eup %1910 }
 0x666   : > { %v1229_v59 = vadd.f32 1.0, %v1911_v53 }
 0x668   : > { %1912 = vrcp.f32 %v1229_v59  ;;  %v1241_v62 = vand.u32 2147483648, %v1229_v59  ;;  %v1239_v54 = vand.u32 2147483647, %v1229_v59  ;;  %vm1235_vm11 = vweird.f32 %v1229_v59 }
 0x66a   : > { %v1242_v58 = vor.u32 1.1754944e-38, %v1241_v62  ;;  %vm1240_vm13 = vcmp.eq.f32.partialorder %v1239_v54, 8.507059e+37 }
 0x66e   : > { %v1913_v25 = vpop.eup %1912 }
 0x66f   : > { %v1231_v12 = vmul.f32 %v1913_v25, %v1229_v59  ;;  %vm1236_vm10 = vweird.f32 %v1913_v25 }
 0x670   : > { %vm1237_vm12 = vmor %vm1235_vm11, %vm1236_vm10 }
 0x671   : > { %v1232_v27 = vsub.f32 1.0, %v1231_v12 }
 0x673   : > { %v1233_v52 = vmul.f32 %v1913_v25, %v1232_v27 }
 0x675   : > { %v1234_v4 = vadd.f32 %v1913_v25, %v1233_v52 }
 0x677   : > { %v1238_v10 = vsel %vm1237_vm12, %v1913_v25, %v1234_v4 }
 0x678   : > { %v1243_v13 = vsel %vm1240_vm13, %v1242_v58, %v1238_v10 }
 0x679   : > { %v1248_v38 = vmul.f32 %v1246_v41, %v1243_v13 }
 0x67b   : > { %v1259_v42 = vmul.f32 %v1257_v16, %v1248_v38 }
 0x67d   : > { %v1260_v57 = vsel %vm395_vm1, %v1259_v42, 0.0  ;;  %v1998_v42 = vmov 42  }
 0x67e   : > { %1261 = vadd.xlane.f32.xlu0 %v1260_v57  ;;  %v1999_v57 = vmov 41  }
 0x692   : > { %191 = vperm.xlu0 %1860, %v2466_v37  }
 0x69a   : > { %1867 = vset.pattern.permute.xlu0 %v2133_v22 }
 0x6f1   : > { %v1262_v46 = vpop.xlane.xlu0 %1261 }
 0x6f2   : > { %v1263_v32 = vadd.f32 %v1262_v46, %v1254_v35 }
 0x6f4   : > { %v1264_v28 = vadd.f32 %v2498_v47, %v1263_v32 }
 0x6f6   : > { %1914 = vtanh.f32 %v1264_v28 }
 0x6fc   : > { %v2534_v56 = vpop.eup %1914 }
 0x6fd   : > { %v1357_v55 = vsub.f32 %v2534_v56, %v1355_v1  ;;  %v1282_v10 = vperm.slane %v2534_v56, 0  ;;  %v1279_v13 = vrot.slane %v2534_v56, 5  ;;  %v1275_v28 = vrot.slane %v2534_v56, 1 }
 0x6fe   : > { %v1278_v20 = vrot.slane %v2534_v56, 4 }
 0x6ff   : > { %1360 = vperm.xlu2 %1859, %v1357_v55   ;;  %v1298_v41 = vmul.f32 %v1838_v48, %v1282_v10  ;;  %v1287_v16 = vperm.slane %v1279_v13, 0  ;;  %v1277_v48 = vrot.slane %v2534_v56, 3  ;;  %v1416_v13 = vld [vmem:[%s2714_s1 + $0x198] sm:$0xff] }
 0x700   : > { %1434 = vmatpush.msrb.mxu3 %v1416_v13 }
 0x701   : > { %v1303_v38 = vmul.f32 %v1851_v2, %v1287_v16  ;;  %v1285_v1 = vperm.slane %v1277_v48, 0  ;;  %v1283_v2 = vperm.slane %v1275_v28, 0  ;;  %v1415_v16 = vld [vmem:[%s2714_s1 + $0x190] sm:$0xff] }
 0x702   : > { %1435 = vmatpush.msrb.mxu3 %v1415_v16 }
 0x703   : > { %v1301_v55 = vmul.f32 %v1845_v29, %v1285_v1  ;;  %v2722_v29 = vunpack.i.l.bf16 %v2187_v26 }
 0x704   : > { %v192_v37 = vpop.permute.xlu0 %191 }
 0x705   : > { %vm194_vm14 = vcmp.eq.f32.partialorder %v2148_v31, %v192_v37  ;;  %v1281_v37 = vrot.slane %v2534_v56, 7 }
 0x706   : > { %v1711_v40 = vsel %vm194_vm14, 1.0, %v1986_v33 }
 0x707   : > { %1364 = vrot.lane.b32.xlu2 %v2498_v47, %s1995_s24  ;;  %v1069_v11 = vperm.slane %v1711_v40, 2  ;;  %v1076_v21 = vperm.slane %v1711_v40, 3  ;;  %v1097_v14 = vperm.slane %v1711_v40, 6  ;;  %v1104_v5 = vperm.slane %v1711_v40, 7  ;;  %s2003_s24 = smov 93  }
 0x708   : > { %1861 = vset.pattern.permute.xlu2 %v2133_v22  ;;  %v1055_v53 = vperm.slane %v1711_v40, 0  ;;  %v1062_v59 = vperm.slane %v1711_v40, 1  ;;  %v1083_v22 = vperm.slane %v1711_v40, 4  ;;  %v1090_v12 = vperm.slane %v1711_v40, 5 }
 0x709   : > { %v1868_v50 = vpack.i.bf16 %v1076_v21, %v1069_v11  ;;  %v1878_v0 = vpack.i.bf16 %v1104_v5, %v1097_v14  ;;  %v1276_v40 = vrot.slane %v2534_v56, 2  ;;  %v1289_v11 = vperm.slane %v1281_v37, 0 }
 0x70a   : > { %v1862_v25 = vpack.i.bf16 %v1062_v59, %v1055_v53  ;;  %v1873_v27 = vpack.i.bf16 %v1090_v12, %v1083_v22  ;;  %v2723_v5 = vunpack.i.l.bf16 %v2178_v19 }
 0x70b   : > { %1869 = vperm.xlu0 %1867, %v1868_v50   ;;  %v1284_v21 = vperm.slane %v1276_v40, 0  ;;  %v1305_v50 = vmul.f32 %v1856_v61, %v1289_v11  ;;  %v2724_v61 = vunpack.i.l.bf16 %v2199_v43 }
 0x70d   : > { %v1300_v14 = vmul.f32 %v2722_v29, %v1284_v21 }
 0x713   : > { %1879 = vperm.xlu0 %1867, %v1878_v0  }
 0x71b   : > { %1884 = vset.pattern.permute.xlu0 %v1998_v42 }
 0x759   : > { %v1361_v9 = vpop.permute.xlu2 %1360 }
 0x75a   : > { %v1363_v18 = vmul.f32 %v2498_v47, %v1361_v9 }
 0x761   : > { %v1365_v63 = vpop.permute.xlu2 %1364 }
 0x762   : > { %v2542_v31 = vadd.f32 %v1365_v63, %v1363_v18 }
 0x764   : > { %v1369_v33 = vsel %vm1368_vm15, %v2542_v31, -inf }
 0x765   : > { %1370 = vmax.xlane.f32.xlu2 %v1369_v33 }
 0x77d   : > { %1863 = vperm.xlu2 %1861, %v1862_v25   ;;  %v1870_v53 = vpop.permute.xlu0 %1869 }
 0x77e   : > { %v1871_v22 = vunpack.i.l.bf16 %v1870_v53 }
 0x785   : > { %1874 = vperm.xlu2 %1861, %v1873_v27   ;;  %v1872_v27 = vunpack.i.h.bf16 %v1870_v53  ;;  %v1880_v10 = vpop.permute.xlu0 %1879 }
 0x786   : > { %v1882_v28 = vunpack.i.h.bf16 %v1880_v10 }
 0x78d   : > { %1883 = vset.pattern.permute.xlu2 %v1999_v57 }
 0x7d8   : > { %v1371_v62 = vpop.xlane.xlu2 %1370 }
 0x7d9   : > { %v1372_v52 = vsub.f32 %v2542_v31, %v1371_v62 }
 0x7db   : > { %v1373_v54 = vmul.f32 1.442695, %v1372_v52  ;;  %v1113_v52 = vmul.f32 %v1871_v22, %v2219_v60 }
 0x7dd   : > { %1916 = vpow2.f32 %v1373_v54 }
 0x7e0   : > { %v1864_v26 = vpop.permute.xlu2 %1863 }
 0x7e1   : > { %v1866_v63 = vunpack.i.h.bf16 %v1864_v26  ;;  %v1865_v33 = vunpack.i.l.bf16 %v1864_v26 }
 0x7e3   : > { %v1917_v47 = vpop.eup %1916  ;;  %v1112_v19 = vmul.f32 %v1866_v63, %v2185_v24  ;;  %v1111_v59 = vmul.f32 %v1865_v33, %v2210_v51 }
 0x7e4   : > { %1376 = vrot.lane.b32.xlu1 %v1917_v47, %s1996_s25  ;;  %s162_s25 = sand.u32 1, %s1975_s13  }
 0x7e5   : > { %v1126_v62 = vsel %vm395_vm1, %v1112_v19, 0.0  ;;  %v1119_v43 = vsel %vm395_vm1, %v1111_v59, 0.0  ;;  %s1629_s7 = scalar_lea.sflag [#allocation3], %s162_s25 }
 0x7e8   : > { %v1875_v25 = vpop.permute.xlu2 %1874 }
 0x7e9   : > { %v1876_v12 = vunpack.i.l.bf16 %v1875_v25  ;;  %v1877_v54 = vunpack.i.h.bf16 %v1875_v25 }
 0x856   : > { %v1377_v4 = vpop.permute.xlu1 %1376 }
 0x857   : > { %v1380_v58 = vsel %vm1379_vm0, %v1377_v4, 0.0  ;;  %v1115_v4 = vmul.f32 %v1876_v12, %v2203_v44 }
 0x858   : > { %1381 = vadd.xlane.f32.xlu1 %v1380_v58  ;;  %v1114_v58 = vmul.f32 %v1872_v27, %v2194_v36 }
 0x871   : > { %1308 = vperm.xlu1 %1885, %v1298_v41   ;;  %v1133_v41 = vsel %vm395_vm1, %v1113_v52, 0.0 }
 0x872   : > { %v1134_v48 = vrot.slane %v1133_v41, 4 }
 0x874   : > { %v1135_v11 = vadd.f32 %v1134_v48, %v1133_v41 }
 0x879   : > { %1333 = vperm.xlu1 %1885, %v1303_v38   ;;  %v1116_v38 = vmul.f32 %v1877_v54, %v2232_v8 }
 0x87b   : > { %v1154_v1 = vsel %vm395_vm1, %v1116_v38, 0.0 }
 0x87c   : > { %v1155_v21 = vrot.slane %v1154_v1, 4 }
 0x881   : > { %1568 = vrot.lane.b32.xlu1 %v2333_v7, %s1997_s28  ;;  %v1299_v7 = vmul.f32 %v1839_v23, %v1283_v2  ;;  %v1286_v23 = vperm.slane %v1278_v20, 0  ;;  %v1413_v20 = vld [vmem:[%s2714_s1 + $0x180] sm:$0xff]  ;;  %s1707_s28 = sshll.u32 %s162_s25, 3 }
 0x882   : > { %s164_s5 = scalar_lea.vmem [#allocation2], %s1707_s28 }
 0x883   : > { %v1302_v0 = vmul.f32 %v2723_v5, %v1286_v23  ;;  %s1641_s6 = sshll.u32 %s164_s5, 4  ;;  %s1642_s6 = int_to_ptr.vmem [resolvable:$true] %s1641_s6 }
 0x8cb   : > { %v1382_v35 = vpop.xlane.xlu1 %1381 }
 0x8cc   : > { %1918 = vrcp.f32 %v1382_v35 }
 0x8d2   : > { %v1919_v46 = vpop.eup %1918 }
 0x8d3   : > { %v1384_v32 = vmul.f32 %v1919_v46, %v1917_v47  ;;  %v1120_v47 = vrot.slane %v1119_v43, 4  ;;  %v1147_v46 = vsel %vm395_vm1, %v1115_v4, 0.0 }
 0x8d4   : > { %v1148_v2 = vrot.slane %v1147_v46, 4 }
 0x8d5   : > { %1408 = vperm.xlu0 %1884, %v1384_v32   ;;  %1387 = vperm.xlu2 %1883, %v1384_v32   ;;  %v1121_v35 = vadd.f32 %v1120_v47, %v1119_v43 }
 0x8d6   : > { %v1149_v29 = vadd.f32 %v1148_v2, %v1147_v46 }
 0x8d7   : > { %v1122_v40 = vrot.slane %v1121_v35, 2 }
 0x8d8   : > { %v1150_v63 = vrot.slane %v1149_v29, 2 }
 0x8da   : > { %v1151_v27 = vadd.f32 %v1150_v63, %v1149_v29 }
 0x8dd   : > { %1887 = vset.pattern.permute.xlu0 %v1994_v49  ;;  %1886 = vset.pattern.permute.xlu2 %v1994_v49  ;;  %v1280_v49 = vrot.slane %v2534_v56, 6 }
 0x8de   : > { %1323 = vperm.xlu0 %1887, %v1301_v55   ;;  %1313 = vperm.xlu2 %1886, %v1299_v7  }
 0x8df   : > { %v1288_v9 = vperm.slane %v1280_v49, 0  ;;  %v1123_v49 = vadd.f32 %v1122_v40, %v1121_v35 }
 0x8e1   : > { %v1304_v18 = vmul.f32 %v2724_v61, %v1288_v9  ;;  %v1136_v9 = vrot.slane %v1135_v11, 2  ;;  %v1156_v61 = vadd.f32 %v1155_v21, %v1154_v1  ;;  %v1124_v19 = vrot.slane %v1123_v49, 1  ;;  %v1892_v21 = vld [vmem:[%s2715_s2 + $0x1] ss:$0 sm:$0xff] }
 0x8e3   : > { %v1137_v59 = vadd.f32 %v1136_v9, %v1135_v11  ;;  %v1157_v22 = vrot.slane %v1156_v61, 2  ;;  %v1125_v52 = vadd.f32 %v1124_v19, %v1123_v49 }
 0x8e5   : > { %v1138_v54 = vrot.slane %v1137_v59, 1  ;;  %v1158_v47 = vadd.f32 %v1157_v22, %v1156_v61 }
 0x8e6   : > { %1343 = vperm.xlu0 %1887, %v1305_v50   ;;  %1318 = vperm.xlu2 %1886, %v1300_v14   ;;  %v1118_v50 = vmul.f32 %v1882_v28, %v2279_v6  ;;  %v1414_v14 = vld [vmem:[%s2714_s1 + $0x188] sm:$0xff] }
 0x8e7   : > { %1436 = vmatpush.msrb.mxu3 %v1414_v14  ;;  %v1139_v13 = vadd.f32 %v1138_v54, %v1137_v59  ;;  %v1159_v38 = vrot.slane %v1158_v47, 1 }
 0x8e9   : > { %1437 = vmatpush.msrb.mxu3 %v1413_v20  ;;  %v1160_v48 = vadd.f32 %v1159_v38, %v1158_v47 }
 0x8ee   : > { %1596 = vrot.lane.b32.xlu0 %v1384_v32, %s2000_s29  ;;  %1328 = vperm.xlu2 %1886, %v1302_v0   ;;  %v1140_v32 = vsel %vm395_vm1, %v1114_v58, 0.0  ;;  %v1152_v58 = vrot.slane %v1151_v27, 1  ;;  %s1724_s29 = sshll.u32 %s2045_s16, 3 }
 0x8ef   : > { %1888 = vset.pattern.permute.xlu0 %v1998_v42  ;;  %v1881_v42 = vunpack.i.l.bf16 %v1880_v10  ;;  %v1141_v55 = vrot.slane %v1140_v32, 4  ;;  %s1639_s4 = scalar_lea.hbm %s2716_s3, %s1724_s29 }
 0x8f0   : > { %s1643_s16 = sshll.u32 %s1639_s4, 4  ;;  %s1644_s16 = int_to_ptr.hbm [resolvable:$true] %s1643_s16 }
 0x8f1   : > { %v1117_v7 = vmul.f32 %v1881_v42, %v2226_v3  ;;  %v1142_v23 = vadd.f32 %v1141_v55, %v1140_v32  ;;  %v1049_v55 = vpop.f32.mrf.mxu3  ;;  %s1935_s8 = sshra.s32 %s1644_s16, 4  ;;  %s1936_s8 = int_to_ptr.hbm [resolvable:$true] %s1935_s8 }
 0x8f2   : > { %v1050_v40 = vadd.f32 %v1049_v55, %v2523_v45  ;;  %v1893_v45 = vld [vmem:[%s2715_s2 + $0x4] ss:$0 sm:$0xff]  ;;  %s1937_s9 = scalar_lea.hbm %s1936_s8, 8  ;;  %p1942_p0 = scmp.lt.s32.totalorder %s1936_s8, %s2716_s3 }
 0x8f3   : > { %v1161_v5 = vsel %vm395_vm1, %v1117_v7, 0.0  ;;  %v1143_v33 = vrot.slane %v1142_v23, 2  ;;  %p1938_p11 = scmp.ne.s32.totalorder %s1936_s8, %s1937_s9  ;;  %p1943_p1 = scmp.lt.s32.totalorder %s1941_s19, %s1937_s9 }
 0x8f4   : > { %v1162_v26 = vrot.slane %v1161_v5, 4  ;;  %v1054_v20 = vadd.f32 %v1892_v21, %v1050_v40 }
 0x8f5   : > { %p1939_p12 = pnand %p1938_p11, %p2062_p5  ;;  %p1944_p2 = por %p1943_p1, %p1942_p0 }
 0x8f6   : > { %1338 = vperm.xlu2 %1886, %v1304_v18   ;;  %v1168_v18 = vsel %vm395_vm1, %v1118_v50, 0.0  ;;  %v1163_v12 = vadd.f32 %v1162_v26, %v1161_v5 }
 0x8f7   : > { %v1169_v25 = vrot.slane %v1168_v18, 4  ;;  %p1940_p13 = pneg %p1939_p12 }
 0x8f8   : > { %v1164_v4 = vrot.slane %v1163_v12, 2 }
 0x8f9   : > { %p1945_p3 = pnand %p1944_p2, %p1940_p13 }
 0x8fa   : > { %v1165_v42 = vadd.f32 %v1164_v4, %v1163_v12 }
 0x8fc   : > { %v1166_v1 = vrot.slane %v1165_v42, 1 }
 0x8fe   : > { %1564 = vrot.lane.b32.xlu2 %v2325_v15, %s1988_s27  ;;  %v1127_v15 = vrot.slane %v1126_v62, 4  ;;  %v1167_v11 = vadd.f32 %v1166_v1, %v1165_v42  ;;  %v1309_v1 = vpop.permute.xlu1 %1308 }
 0x900   : > { %v1128_v57 = vadd.f32 %v1127_v15, %v1126_v62  ;;  %v1144_v62 = vadd.f32 %v1143_v33, %v1142_v23  ;;  %v1170_v15 = vadd.f32 %v1169_v25, %v1168_v18 }
 0x902   : > { %v1129_v37 = vrot.slane %v1128_v57, 2  ;;  %v1145_v10 = vrot.slane %v1144_v62, 1  ;;  %v1171_v16 = vrot.slane %v1170_v15, 2 }
 0x904   : > { %v1130_v0 = vadd.f32 %v1129_v37, %v1128_v57  ;;  %v1153_v57 = vadd.f32 %v1152_v58, %v1151_v27  ;;  %v1146_v46 = vadd.f32 %v1145_v10, %v1144_v62  ;;  %v1172_v32 = vadd.f32 %v1171_v16, %v1170_v15 }
 0x906   : > { %v1131_v53 = vrot.slane %v1130_v0, 1  ;;  %v1173_v7 = vrot.slane %v1172_v32, 1 }
 0x908   : > { %v1132_v43 = vadd.f32 %v1131_v53, %v1130_v0  ;;  %v1174_v29 = vadd.f32 %v1173_v7, %v1172_v32 }
 0x90a   : > { %v1398_v41 = vsel %vm437_vm2, %v1132_v43, %v1125_v52 }
 0x90b   : > { %v1399_v35 = vsel %vm439_vm3, %v1139_v13, %v1398_v41 }
 0x90c   : > { %v1400_v28 = vsel %vm441_vm4, %v1146_v46, %v1399_v35 }
 0x90d   : > { %v1401_v2 = vsel %vm443_vm5, %v1153_v57, %v1400_v28 }
 0x90e   : > { %v1402_v37 = vsel %vm445_vm6, %v1160_v48, %v1401_v2  ;;  %v1268_v2 = vld [vmem:[%s2091_s11 + $0xa8] sm:$0xff] }
 0x90f   : > { %v1403_v50 = vsel %vm447_vm7, %v1167_v11, %v1402_v37 }
 0x910   : > { %v1404_v23 = vsel %vm449_vm8, %v1174_v29, %v1403_v50  ;;  %v1266_v29 = vld [vmem:[%s2091_s11 + $0x98] sm:$0xff] }
 0x92f   : > { %v1388_v14 = vpop.permute.xlu2 %1387 }
 0x930   : > { %v1406_v0 = vmul.f32 %v1404_v23, %v1388_v14  ;;  %v1267_v14 = vld [vmem:[%s2091_s11 + $0xa0] sm:$0xff] }
 0x938   : > { %v1314_v47 = vpop.permute.xlu2 %1313 }
 0x940   : > { %v1319_v41 = vpop.permute.xlu2 %1318 }
 0x941   : > { %v1348_v55 = vsub.f32 %v1319_v41, %v1268_v2  ;;  %v1579_v2 = vadd.s32 4294967216, %v2145_v30 }
 0x947   : > { %v1409_v5 = vpop.permute.xlu0 %1408 }
 0x948   : > { %v1411_v49 = vmul.f32 %v1409_v5, %v1054_v20  ;;  %v1329_v46 = vpop.permute.xlu2 %1328  ;;  %v1346_v20 = vsub.f32 %v1309_v1, %v1266_v29  ;;  %v1347_v5 = vsub.f32 %v1314_v47, %v1267_v14 }
 0x94a   : > { %v1412_v9 = vadd.f32 %v1411_v49, %v1406_v0 }
 0x94c   : > { %1722 = vmatmul.msk.f32.vlgmr.msrb.gmra.mxu3 %vm395_vm1, %v1412_v9 }
 0x950   : > { %v1339_v28 = vpop.permute.xlu2 %1338 }
 0x9cf   : > { %v1439_v61 = vpop.f32.mrf.mxu3 }
 0x9d0   : > { %v1440_v18 = vadd.f32 %v1893_v45, %v1439_v61  ;;  %v1270_v61 = vld [vmem:[%s2091_s11 + $0xb8] sm:$0xff] }
 0x9d2   : > { %v1450_v26 = vperm.slane %v1440_v18, 0  ;;  %v1444_v63 = vrot.slane %v1440_v18, 2  ;;  %v1443_v33 = vrot.slane %v1440_v18, 1  ;;  %v1445_v59 = vrot.slane %v1440_v18, 3 }
 0x9d3   : > { %v1446_v25 = vrot.slane %v1440_v18, 4  ;;  %v1447_v22 = vrot.slane %v1440_v18, 5  ;;  %v1448_v43 = vrot.slane %v1440_v18, 6  ;;  %v1449_v52 = vrot.slane %v1440_v18, 7  ;;  %v1269_v18 = vld [vmem:[%s2091_s11 + $0xb0] sm:$0xff] }
 0x9d4   : > { %1498 = vrot.lane.b32.xlu0 %v1450_v26, %s1987_s26  ;;  %v1452_v53 = vperm.slane %v1444_v63, 0  ;;  %v1451_v19 = vperm.slane %v1443_v33, 0  ;;  %v1453_v12 = vperm.slane %v1445_v59, 0  ;;  %v1466_v4 = vmul.f32 %v1450_v26, %v2210_v51  ;;  %v1271_v33 = vld [vmem:[%s2091_s11 + $0xc0] sm:$0xff] }
 0x9d5   : > { %v1454_v27 = vperm.slane %v1446_v25, 0  ;;  %v1455_v62 = vperm.slane %v1447_v22, 0  ;;  %v1456_v54 = vperm.slane %v1448_v43, 0  ;;  %v1457_v15 = vperm.slane %v1449_v52, 0  ;;  %v1272_v52 = vld [vmem:[%s2091_s11 + $0xc8] sm:$0xff] }
 0x9d6   : > { %1502 = vrot.lane.b32.xlu2 %v1452_v53, %s1987_s26  ;;  %1500 = vrot.lane.b32.xlu1 %v1451_v19, %s1987_s26  ;;  %v1474_v58 = vsel %vm395_vm1, %v1466_v4, 0.0  ;;  %v1468_v10 = vmul.f32 %v1452_v53, %v2219_v60  ;;  %v1467_v13 = vmul.f32 %v1451_v19, %v2185_v24  ;;  %v1469_v16 = vmul.f32 %v1453_v12, %v2194_v36 }
 0x9d7   : > { %v1471_v51 = vmul.f32 %v1455_v62, %v2232_v8  ;;  %v1470_v35 = vmul.f32 %v1454_v27, %v2203_v44  ;;  %v1472_v60 = vmul.f32 %v1456_v54, %v2226_v3  ;;  %v1473_v48 = vmul.f32 %v1457_v15, %v2279_v6  ;;  %v2642_v44 = vpop.permute.xlu2 %1564  ;;  %v1324_v3 = vpop.permute.xlu0 %1323 }
 0x9d8   : > { %v1480_v38 = vsel %vm395_vm1, %v1468_v10, 0.0  ;;  %v1477_v42 = vsel %vm395_vm1, %v1467_v13, 0.0  ;;  %v1483_v57 = vsel %vm395_vm1, %v1469_v16, 0.0  ;;  %v1334_v6 = vpop.permute.xlu1 %1333  ;;  %v1350_v53 = vsub.f32 %v1329_v46, %v1270_v61 }
 0x9d9   : > { %v1489_v24 = vsel %vm395_vm1, %v1471_v51, 0.0  ;;  %v1486_v36 = vsel %vm395_vm1, %v1470_v35, 0.0  ;;  %v1492_v32 = vsel %vm395_vm1, %v1472_v60, 0.0  ;;  %v1495_v8 = vsel %vm395_vm1, %v1473_v48, 0.0 }
 0x9da   : > { %v1349_v19 = vsub.f32 %v1324_v3, %v1269_v18  ;;  %v1351_v25 = vsub.f32 %v1334_v6, %v1271_v33 }
 0x9dc   : > { %1504 = vrot.lane.b32.xlu0 %v1453_v12, %s1987_s26 }
 0x9de   : > { %1506 = vrot.lane.b32.xlu2 %v1454_v27, %s1987_s26  ;;  %1508 = vrot.lane.b32.xlu1 %v1455_v62, %s1987_s26 }
 0x9df   : > { %v1344_v11 = vpop.permute.xlu0 %1343 }
 0x9e0   : > { %v2648_v50 = vpop.permute.xlu1 %1568 }
 0x9e4   : > { %1510 = vrot.lane.b32.xlu0 %v1456_v54, %s1987_s26  ;;  %v1273_v54 = vld [vmem:[%s2091_s11 + $0xd0] sm:$0xff]  ;;  %s2001_s11 = smov 52  }
 0x9e5   : > { %v1353_v10 = vsub.f32 %v1344_v11, %v1273_v54 }
 0x9e6   : > { %1512 = vrot.lane.b32.xlu2 %v1457_v15, %s1987_s26  ;;  %s2002_s26 = smov 49  }
 0x9e7   : > { %v2646_v21 = vpop.permute.xlu0 %1596 }
 0xa08   : > { %1475 = vadd.xlane.f32.xlu1 %v1474_v58  ;;  %v1352_v58 = vsub.f32 %v1339_v28, %v1272_v52 }
 0xa0e   : > { %1481 = vadd.xlane.f32.xlu0 %v1480_v38 }
 0xa0f   : > { %1478 = vadd.xlane.f32.xlu2 %v1477_v42 }
 0xa10   : > { %1484 = vadd.xlane.f32.xlu1 %v1483_v57 }
 0xa16   : > { %1490 = vadd.xlane.f32.xlu0 %v1489_v24 }
 0xa17   : > { %1487 = vadd.xlane.f32.xlu2 %v1486_v36 }
 0xa18   : > { %1493 = vadd.xlane.f32.xlu1 %v1492_v32 }
 0xa1f   : > { %1496 = vadd.xlane.f32.xlu2 %v1495_v8 }
 0xa30   : > { %v1503_v7 = vpop.permute.xlu2 %1502 }
 0xa31   : > { %v1524_v37 = vmul.f32 %v1503_v7, %v1348_v55 }
 0xa33   : > { %v1536_v40 = vsel %vm453_vm9, %v1524_v37, 0.0 }
 0xa34   : > { %1537 = vadd.xlane.f32.xlu2 %v1536_v40 }
 0xa38   : > { %v1507_v26 = vpop.permute.xlu2 %1506 }
 0xa39   : > { %v1526_v22 = vmul.f32 %v1507_v26, %v1350_v53 }
 0xa3b   : > { %v1542_v15 = vsel %vm453_vm9, %v1526_v22, 0.0 }
 0xa40   : > { %v1513_v4 = vpop.permute.xlu2 %1512 }
 0xa41   : > { %v1529_v13 = vmul.f32 %v1513_v4, %v1353_v10 }
 0xa43   : > { %v1551_v42 = vsel %vm453_vm9, %v1529_v13, 0.0 }
 0xa46   : > { %v1499_v23 = vpop.permute.xlu0 %1498 }
 0xa47   : > { %v1522_v0 = vmul.f32 %v1499_v23, %v1346_v20 }
 0xa48   : > { %v1501_v49 = vpop.permute.xlu1 %1500 }
 0xa49   : > { %v1523_v9 = vmul.f32 %v1501_v49, %v1347_v5  ;;  %v1530_v45 = vsel %vm453_vm9, %v1522_v0, 0.0 }
 0xa4a   : > { %1531 = vadd.xlane.f32.xlu1 %v1530_v45 }
 0xa4b   : > { %v1533_v63 = vsel %vm453_vm9, %v1523_v9, 0.0 }
 0xa4c   : > { %1534 = vadd.xlane.f32.xlu0 %v1533_v63 }
 0xa4e   : > { %v1505_v59 = vpop.permute.xlu0 %1504 }
 0xa4f   : > { %v1525_v12 = vmul.f32 %v1505_v59, %v1349_v19  ;;  %v1610_v19 = vsel %vm395_vm1, %v2516_v17, %v2478_v39  ;;  %vm1623_vm1 = vcmask 760832  }
 0xa50   : > { %v1509_v27 = vpop.permute.xlu1 %1508 }
 0xa51   : > { %v1527_v62 = vmul.f32 %v1509_v27, %v1351_v25  ;;  %v1539_v43 = vsel %vm453_vm9, %v1525_v12, 0.0 }
 0xa52   : > { %1540 = vadd.xlane.f32.xlu1 %v1539_v43 }
 0xa53   : > { %v1545_v47 = vsel %vm453_vm9, %v1527_v62, 0.0 }
 0xa54   : > { %1543 = vadd.xlane.f32.xlu0 %v1542_v15  ;;  %1546 = vadd.xlane.f32.xlu2 %v1545_v47 }
 0xa56   : > { %v1511_v41 = vpop.permute.xlu0 %1510 }
 0xa57   : > { %v1528_v16 = vmul.f32 %v1511_v41, %v1352_v58 }
 0xa59   : > { %v1548_v38 = vsel %vm453_vm9, %v1528_v16, 0.0  ;;  %vm1611_vm9 = vcmask 523264  }
 0xa5a   : > { %1549 = vadd.xlane.f32.xlu1 %v1548_v38  ;;  %v1612_v59 = vsel %vm1611_vm9, %v1610_v19, %v2642_v44 }
 0xa5c   : > { %1552 = vadd.xlane.f32.xlu0 %v1551_v42 }
 0xa6c   : > { %1603 = vrot.lane.b32.xlu2 %v2534_v56, %s2001_s11 }
 0xa70   : > { %1600 = vrot.lane.b32.xlu0 %v2542_v31, %s2002_s26 }
 0xa73   : > { %1607 = vrot.lane.b32.xlu1 %v2152_v34, %s2003_s24 }
 0xa7b   : > { %v1476_v57 = vpop.xlane.xlu1 %1475 }
 0xa81   : > { %v1482_v60 = vpop.xlane.xlu0 %1481 }
 0xa82   : > { %v1479_v51 = vpop.xlane.xlu2 %1478 }
 0xa83   : > { %v1485_v35 = vpop.xlane.xlu1 %1484 }
 0xa89   : > { %v1491_v36 = vpop.xlane.xlu0 %1490 }
 0xa8a   : > { %v1488_v46 = vpop.xlane.xlu2 %1487 }
 0xa8b   : > { %v1494_v24 = vpop.xlane.xlu1 %1493 }
 0xa92   : > { %v1497_v32 = vpop.xlane.xlu2 %1496 }
 0xaa7   : > { %v1538_v8 = vpop.xlane.xlu2 %1537 }
 0xaa8   : > { %v1556_v34 = vadd.f32 %v1538_v8, %v1482_v60 }
 0xaaa   : > { %v1582_v20 = vperm.slane %v1556_v34, %v1579_v2 }
 0xabd   : > { %v1532_v48 = vpop.xlane.xlu1 %1531 }
 0xabe   : > { %v1554_v31 = vadd.f32 %v1532_v48, %v1476_v57 }
 0xabf   : > { %v1535_v28 = vpop.xlane.xlu0 %1534 }
 0xac0   : > { %v1555_v1 = vadd.f32 %v1535_v28, %v1479_v51  ;;  %v1580_v37 = vperm.slane %v1554_v31, %v1579_v2 }
 0xac2   : > { %v1581_v55 = vperm.slane %v1555_v1, %v1579_v2 }
 0xac4   : > { %v1588_v6 = vsel %vm437_vm2, %v1581_v55, %v1580_v37  ;;  %vm1613_vm2 = vcmask 588800  }
 0xac5   : > { %v1541_v3 = vpop.xlane.xlu1 %1540  ;;  %v1589_v5 = vsel %vm439_vm3, %v1582_v20, %v1588_v6  ;;  %vm1615_vm3 = vcmask 654336   ;;  %v1614_v22 = vsel %vm1613_vm2, %v1612_v59, %v2648_v50 }
 0xac6   : > { %v1557_v7 = vadd.f32 %v1541_v3, %v1485_v35 }
 0xac7   : > { %v1544_v56 = vpop.xlane.xlu0 %1543  ;;  %v1547_v11 = vpop.xlane.xlu2 %1546 }
 0xac8   : > { %v1558_v40 = vadd.f32 %v1544_v56, %v1488_v46  ;;  %v1583_v29 = vperm.slane %v1557_v7, %v1579_v2  ;;  %v1559_v23 = vadd.f32 %v1547_v11, %v1491_v36 }
 0xaca   : > { %v1584_v0 = vperm.slane %v1558_v40, %v1579_v2  ;;  %v1590_v30 = vsel %vm441_vm4, %v1583_v29, %v1589_v5  ;;  %v1585_v45 = vperm.slane %v1559_v23, %v1579_v2  ;;  %vm1617_vm4 = vcmask 719872  }
 0xacc   : > { %v1591_v18 = vsel %vm443_vm5, %v1584_v0, %v1590_v30  ;;  %vm1619_vm5 = vcmask 736256  }
 0xacd   : > { %v1550_v14 = vpop.xlane.xlu1 %1549  ;;  %v1592_v63 = vsel %vm445_vm6, %v1585_v45, %v1591_v18  ;;  %vm1621_vm6 = vcmask 752640  }
 0xace   : > { %v1560_v49 = vadd.f32 %v1550_v14, %v1494_v24 }
 0xacf   : > { %v1553_v9 = vpop.xlane.xlu0 %1552  ;;  %v1604_v27 = vpop.permute.xlu2 %1603 }
 0xad0   : > { %v1561_v61 = vadd.f32 %v1553_v9, %v1497_v32  ;;  %v1586_v26 = vperm.slane %v1560_v49, %v1579_v2 }
 0xad2   : > { %v1587_v33 = vperm.slane %v1561_v61, %v1579_v2  ;;  %v1593_v53 = vsel %vm447_vm7, %v1586_v26, %v1592_v63  ;;  %vm1625_vm7 = vcmask 826368  }
 0xad4   : > { %v1594_v25 = vsel %vm449_vm8, %v1587_v33, %v1593_v53 }
 0xad5   : > { %v1616_v12 = vsel %vm1615_vm3, %v1614_v22, %v1594_v25 }
 0xad6   : > { %v1618_v17 = vsel %vm1617_vm4, %v1616_v12, %v2646_v21 }
 0xae2   : > { %v1601_v39 = vpop.permute.xlu0 %1600 }
 0xae3   : > { %v1620_v44 = vsel %vm1619_vm5, %v1618_v17, %v1601_v39 }
 0xae4   : > { %v1622_v50 = vsel %vm1621_vm6, %v1620_v44, %v1604_v27 }
 0xae5   : > { %v1608_v62 = vpop.permute.xlu1 %1607 }
 0xae6   : > { %v1624_v43 = vsel %vm1623_vm1, %v1622_v50, %v1608_v62 }
 0xae7   : > { %v1626_v52 = vsel %vm1625_vm7, %v1624_v43, 0.0 }
 0xae8   : > { %1627 = vst [vmem:[%s164_s5] sm:$0xff] %v1626_v52 }
 0xae9   : > { %1948 = shalt.err (!%p1945_p3)
}
 0xaea   : > { %1775 = dma.vmem_to_hbm [thread:$0]  (%p2062_p5), %s1642_s6, 128, %s1644_s16, %s1629_s7  }
 0xaeb PF: > { %p1781_p4 = scmp.ge.s32.totalorder %s1983_s15, 2  ;;  %s1655_s26 = sand.u32 1, %s1971_s12  }
 0xaec   : > { %s1656_s24 = scalar_lea.sflag [#allocation3], %s1655_s26 }
 0xaed   : > { %p1778_p7 = pnand %p1781_p4, %p2066_p6 }
 0xaef   : > { %p1779_p8 = pneg %p1778_p7 }
 0xaf1   : > { %1966 = dma.done.wait (%p1779_p8), %s1656_s24, 128  }
 0xaf2   : > { %1968 = vsyncadd (%p1779_p8), %s1656_s24, 4294967168  ;;  %p13_p9 = scmp.ge.s32.totalorder %s2049_s18, 4   ;;  %s2725_s12 = smov %s1975_s13 }
 0xaf3   : > { %s2726_s13 = smov %s1979_s14  ;;  %s2727_s14 = smov %s2060_s21 }
 0xaf4   : > { %s2728_s15 = smov %s2049_s18  ;;  %15 = sbr.rel (!%p13_p9) target bundleno = 3 (0x3), region = 67 }
 0xaf9   :  { %1662 = vsyncpa [#allocation3], 1 }
 0xafa   :  { %1664 = vsyncpa [#allocation3 + $0x1], 1 }

</bundles_post_ra>
